<compile_context>
chip_gen: v7x
topology: tpu7x:2x2x1
jax: 0.10.0
libtpu: 0.0.40
codegen_flags: <defaults>
</compile_context>

<pallas_src>
import jax
import jax.numpy as jnp
from jax.experimental import pallas as pl
from jax.experimental.pallas import tpu as pltpu

EEG_DIM = 1000
H_DIM = 1500

EEG_PAD = 1024           # 1000 -> next multiple of 128
H_PAD = 1536             # 1500 -> next multiple of 128
LANES = 128


def _num_tensorcores() -> int:
    """Perf-only heuristic: 1 TC on v5e/v6e (and older lite chips), 2 otherwise
    (v4/v5p megacore, v7x). Wrong guesses only cost a few hundred ns."""
    try:
        kind = jax.devices()[0].device_kind.lower()
    except Exception:
        return 1
    if ("lite" in kind or "v5e" in kind or "v6e" in kind
            or "v2" in kind or "v3" in kind):
        return 1
    return 2


NB = _num_tensorcores()          # hidden-dim blocks (megacore-parallel when 2)
H_BLK = H_PAD // NB              # 1536 or 768 -- always a multiple of 128


def _netd2_kernel(x_ref, w1_ref, b1_ref, w2_ref, out_ref):
    # One hidden-dim block per grid step:
    #   x_ref  : [Bp, EEG_PAD]    bf16 (VMEM-resident, same block every step)
    #   w1_ref : [EEG_PAD, H_BLK] bf16 (the only big HBM stream)
    #   b1_ref : [1, H_BLK] f32,  w2_ref: [1, H_BLK] f32
    #   out_ref: [Bp, 128]  f32   -- lane-folded partial of the second Linear
    h = jnp.dot(x_ref[...], w1_ref[...],
                preferred_element_type=jnp.float32)            # native bf16 MXU pass
    h = jnp.maximum(h + b1_ref[...], 0.0)                      # bias + ReLU (VPU, f32)
    hw = h * w2_ref[...]                                       # [Bp, H_BLK]
    # Fold H_BLK lanes down to one lane-dense 128-wide partial with aligned
    # static slices (VPU adds) -- avoids an N=1 MXU matmul / full XLU reduce.
    acc = hw[:, 0:LANES]
    for c in range(1, H_BLK // LANES):
        acc = acc + hw[:, c * LANES:(c + 1) * LANES]
    out_ref[...] = acc


def init_params(key):
    """Raw f32 params, pre-transposed vs. PyTorch: W1 [eeg, h], W2 as a [1, h] row."""
    k1, k2, k3, k4 = jax.random.split(key, 4)
    s1 = 1.0 / jnp.sqrt(EEG_DIM)
    s2 = 1.0 / jnp.sqrt(H_DIM)
    w1 = jax.random.uniform(k1, (EEG_DIM, H_DIM), jnp.float32, -s1, s1)
    b1 = jax.random.uniform(k2, (1, H_DIM), jnp.float32, -s1, s1)
    w2 = jax.random.uniform(k3, (1, H_DIM), jnp.float32, -s2, s2)
    b2 = jax.random.uniform(k4, (1, 1), jnp.float32, -s2, s2)
    return w1, b1, w2, b2


def prepare_params(w1, b1, w2, b2):
    """Zero-pad to (8,128)-aligned shapes; W1 stored as bf16 for HBM streaming."""
    w1_p = jnp.zeros((EEG_PAD, H_PAD), jnp.bfloat16).at[:EEG_DIM, :H_DIM].set(
        w1.astype(jnp.bfloat16))
    b1_p = jnp.zeros((1, H_PAD), jnp.float32).at[:, :H_DIM].set(b1)
    w2_p = jnp.zeros((1, H_PAD), jnp.float32).at[:, :H_DIM].set(w2)
    return w1_p, b1_p, w2_p, b2


def netd2_forward(eeg_feat, params):
    """eeg_feat: [B, EEG_DIM] f32 -> [B, 1] f32 (same math as the PyTorch module)."""
    w1_p, b1_p, w2_p, b2 = params
    B = eeg_feat.shape[0]
    Bp = max(16, -(-B // 16) * 16)                 # bf16 sublane packing is (16,128)
    # Zero-pad batch/feature dims and cast activations to bf16 once, wrapper-side.
    x = jnp.zeros((Bp, EEG_PAD), jnp.bfloat16).at[:B, :EEG_DIM].set(
        eeg_feat.astype(jnp.bfloat16))

    cost = pl.CostEstimate(
        flops=2 * Bp * EEG_PAD * H_PAD + 3 * Bp * H_PAD,
        transcendentals=0,
        bytes_accessed=(w1_p.size * 2 + x.size * 2 + b1_p.size * 4
                        + w2_p.size * 4 + Bp * NB * LANES * 4),
    )

    # NOTE: for training-sized batches, add an outer "parallel" grid axis over
    # 128-256-row blocks of x/out.  Keep W1's index_map constant across it only
    # if W1 stays VMEM-resident (3 MiB bf16 fits easily); otherwise make the W1
    # column axis the innermost grid axis so each W1 block streams once per row
    # block instead of once per (row, col) pair.  At B<=16 it only adds overhead.
    partial = pl.pallas_call(
        _netd2_kernel,
        out_shape=jax.ShapeDtypeStruct((Bp, NB * LANES), jnp.float32),
        grid=(NB,),
        in_specs=[
            pl.BlockSpec((Bp, EEG_PAD), lambda i: (0, 0)),     # x (bf16, resident)
            pl.BlockSpec((EEG_PAD, H_BLK), lambda i: (0, i)),  # W1 column block (bf16)
            pl.BlockSpec((1, H_BLK), lambda i: (0, i)),        # b1 block
            pl.BlockSpec((1, H_BLK), lambda i: (0, i)),        # w2 block
        ],
        out_specs=pl.BlockSpec((Bp, LANES), lambda i: (0, i)),
        compiler_params=pltpu.CompilerParams(
            dimension_semantics=("parallel",),   # v7x/megacore: one H block per TC
            vmem_limit_bytes=8 << 20,            # 2x bf16 W1 block + x + tiny rest
        ),
        cost_estimate=cost,
    )(x, w1_p, b1_p, w2_p)

    out = jnp.sum(partial, axis=-1, keepdims=True) + b2        # tiny final reduce
    return out[:B]


if __name__ == "__main__":
    key = jax.random.PRNGKey(0)
    kx, kp = jax.random.split(key)
    B = 8  # small batch; eeg_dim / h_dim are fixed by the module definition
    x = jax.random.normal(kx, (B, EEG_DIM), jnp.float32)

    raw = init_params(kp)
    params = prepare_params(*raw)

    out = jax.block_until_ready(netd2_forward(x, params))
    assert out.shape == (B, 1)

    # Tight reference using the exact bf16-rounded operands the kernel streams
    # (identical module math apart from that storage/activation rounding).
    w1_raw, b1, w2, b2 = raw
    w1_used = params[0][:EEG_DIM, :H_DIM].astype(jnp.float32)
    x_used = x.astype(jnp.bfloat16).astype(jnp.float32)
    h_ref = jnp.maximum(x_used @ w1_used + b1, 0.0)
    ref = jnp.sum(h_ref * w2, axis=-1, keepdims=True) + b2
    assert jnp.allclose(out, ref, atol=1e-2, rtol=1e-2), "mismatch vs bf16 reference"

    # Looser check against the original full-f32 module (bounds the bf16 rounding).
    h32 = jnp.maximum(x @ w1_raw + b1, 0.0)
    ref32 = jnp.sum(h32 * w2, axis=-1, keepdims=True) + b2
    assert jnp.allclose(out, ref32, atol=5e-2, rtol=5e-2), "mismatch vs f32 reference"

    print("KERNEL_OK")
</pallas_src>

<mosaic_0001>
module attributes {stable_mosaic.version = 11 : i64} {
  func.func @_netd2_kernel(%arg0: i32, %arg1: memref<16x1024xbf16, #tpu.memory_space<vmem>>, %arg2: memref<1024x768xbf16, #tpu.memory_space<vmem>>, %arg3: memref<1x768xf32, #tpu.memory_space<vmem>>, %arg4: memref<1x768xf32, #tpu.memory_space<vmem>>, %arg5: memref<16x128xf32, #tpu.memory_space<vmem>>) attributes {dimension_semantics = [#tpu.dimension_semantics<parallel>], iteration_bounds = array<i64: 2>, scalar_prefetch = 0 : i64, scratch_operands = 0 : i64, tpu.core_type = #tpu.core_type<tc>, window_params = [{pipeline_mode = #tpu.pipeline_mode<synchronous>, transform_indices = @transform_0, window_bounds = array<i64: 16, 1024>}, {transform_indices = @transform_1, window_bounds = array<i64: 1024, 768>}, {transform_indices = @transform_2, window_bounds = array<i64: 1, 768>}, {transform_indices = @transform_3, window_bounds = array<i64: 1, 768>}, {transform_indices = @transform_4, window_bounds = array<i64: 16, 128>}]} {
    %c0 = arith.constant 0 : index
    %c0_0 = arith.constant 0 : index
    %0 = vector.load %arg1[%c0, %c0_0] : memref<16x1024xbf16, #tpu.memory_space<vmem>>, vector<16x1024xbf16>
    %c0_1 = arith.constant 0 : index
    %c0_2 = arith.constant 0 : index
    %1 = vector.load %arg2[%c0_1, %c0_2] : memref<1024x768xbf16, #tpu.memory_space<vmem>>, vector<1024x768xbf16>
    %cst = arith.constant dense<0.000000e+00> : vector<16x768xf32>
    %2 = tpu.matmul %0, %1, %cst {dimension_numbers = #tpu.dot_dimension_numbers<[1], [0], [0], [1], [0, 0, 1, 1], [], []>} : vector<16x1024xbf16>, vector<1024x768xbf16>, vector<16x768xf32> -> vector<16x768xf32>
    %c0_3 = arith.constant 0 : index
    %c0_4 = arith.constant 0 : index
    %3 = vector.load %arg3[%c0_3, %c0_4] : memref<1x768xf32, #tpu.memory_space<vmem>>, vector<1x768xf32>
    %4 = vector.broadcast %3 : vector<1x768xf32> to vector<16x768xf32>
    %5 = arith.addf %2, %4 : vector<16x768xf32>
    %cst_5 = arith.constant 0.000000e+00 : f32
    %6 = vector.broadcast %cst_5 : f32 to vector<16x768xf32>
    %7 = arith.maximumf %5, %6 : vector<16x768xf32>
    %c0_6 = arith.constant 0 : index
    %c0_7 = arith.constant 0 : index
    %8 = vector.load %arg4[%c0_6, %c0_7] : memref<1x768xf32, #tpu.memory_space<vmem>>, vector<1x768xf32>
    %9 = vector.broadcast %8 : vector<1x768xf32> to vector<16x768xf32>
    %10 = arith.mulf %7, %9 : vector<16x768xf32>
    %11 = vector.extract_strided_slice %10 {offsets = [0, 0], sizes = [16, 128], strides = [1, 1]} : vector<16x768xf32> to vector<16x128xf32>
    %12 = vector.extract_strided_slice %10 {offsets = [0, 128], sizes = [16, 128], strides = [1, 1]} : vector<16x768xf32> to vector<16x128xf32>
    %13 = arith.addf %11, %12 : vector<16x128xf32>
    %14 = vector.extract_strided_slice %10 {offsets = [0, 256], sizes = [16, 128], strides = [1, 1]} : vector<16x768xf32> to vector<16x128xf32>
    %15 = arith.addf %13, %14 : vector<16x128xf32>
    %16 = vector.extract_strided_slice %10 {offsets = [0, 384], sizes = [16, 128], strides = [1, 1]} : vector<16x768xf32> to vector<16x128xf32>
    %17 = arith.addf %15, %16 : vector<16x128xf32>
    %18 = vector.extract_strided_slice %10 {offsets = [0, 512], sizes = [16, 128], strides = [1, 1]} : vector<16x768xf32> to vector<16x128xf32>
    %19 = arith.addf %17, %18 : vector<16x128xf32>
    %20 = vector.extract_strided_slice %10 {offsets = [0, 640], sizes = [16, 128], strides = [1, 1]} : vector<16x768xf32> to vector<16x128xf32>
    %21 = arith.addf %19, %20 : vector<16x128xf32>
    %c0_8 = arith.constant 0 : index
    %c0_9 = arith.constant 0 : index
    %22 = vector.load %arg5[%c0_8, %c0_9] : memref<16x128xf32, #tpu.memory_space<vmem>>, vector<16x128xf32>
    tpu.vector_store %arg5[%c0_8, %c0_9], %21 {strides = array<i32>} : memref<16x128xf32, #tpu.memory_space<vmem>>, vector<16x128xf32>,
    return
  }
  func.func @transform_0(%arg0: i32) -> (i32, i32) {
    %c0_i32 = arith.constant 0 : i32
    %c0_i32_0 = arith.constant 0 : i32
    %c0_i32_1 = arith.constant 0 : i32
    return %c0_i32, %c0_i32_0 : i32, i32
  }
  func.func @transform_1(%arg0: i32) -> (i32, i32) {
    %c0_i32 = arith.constant 0 : i32
    %c0_i32_0 = arith.constant 0 : i32
    return %c0_i32, %arg0 : i32, i32
  }
  func.func @transform_2(%arg0: i32) -> (i32, i32) {
    %c0_i32 = arith.constant 0 : i32
    %c0_i32_0 = arith.constant 0 : i32
    return %c0_i32, %arg0 : i32, i32
  }
  func.func @transform_3(%arg0: i32) -> (i32, i32) {
    %c0_i32 = arith.constant 0 : i32
    %c0_i32_0 = arith.constant 0 : i32
    return %c0_i32, %arg0 : i32, i32
  }
  func.func @transform_4(%arg0: i32) -> (i32, i32) {
    %c0_i32 = arith.constant 0 : i32
    %c0_i32_0 = arith.constant 0 : i32
    return %c0_i32, %arg0 : i32, i32
  }
}

</mosaic_0001>

<bundles_post_ra>
// kernel: tpu_custom_call.1
= control target key start
LH: loop header
LB: loop body
LE: loop exit
PB: predicated region body
PF: predicated region fallthrough
CT: control target
= control target key end

     0   :  { %s5507_s0 = inlined_call_operand.hbm [shape: bf16[16,1024], index: 0, kind: input, shape index: {}]   ;;  %s5508_s1 = inlined_call_operand.hbm [shape: bf16[1024,1536], index: 1, kind: input, shape index: {}]   ;;  %s5509_s2 = inlined_call_operand.hbm [shape: f32[1,1536], index: 2, kind: input, shape index: {}]   ;;  %s5510_s3 = inlined_call_operand.hbm [shape: f32[1,1536], index: 3, kind: input, shape index: {}]   ;;  %s5511_s4 = inlined_call_operand.hbm [shape: f32[16,256], index: 4, kind: output, shape index: {}]  }
   0x1   :  { %5526 = sst [smem:[#allocation20_spill]] %s5508_s1 }
   0x2   :  { %9 = vsyncpa [#allocation3], 0 }
   0x3   :  { %10 = vsyncpa [#allocation6], 0 }
   0x4   :  { %12 = vsyncpa [#allocation6 + $0x1], 0 }
   0x5   :  { %13 = vsyncpa [#allocation9], 0 }
   0x6   :  { %15 = vsyncpa [#allocation9 + $0x1], 0 }
   0x7   :  { %16 = vsyncpa [#allocation4], 0 }
   0x8   :  { %18 = vsyncpa [#allocation4 + $0x1], 0  ;;  %s4761_s15 = smov 0   ;;  %s4763_s16 = smov 0  }
   0x9   :  { %s4765_s17 = smov 0   ;;  %s4767_s18 = smov 0  }
   0xa LB: > { %5527 = sst [smem:[#allocation15_spill]] %s4717_s17  ;;  %s4782_s19 = sadd.s32 1, %s4721_s18   ;;  %s4721_s18 = sphi %s4767_s18, %s5553_s18   ;;  %s4717_s17 = sphi %s4765_s17, %s5555_s17   ;;  %s4713_s16 = sphi %s4763_s16, %s5557_s16   ;;  %s4709_s15 = sphi %s4761_s15, %s5556_s15  }
   0xb   : > { %5528 = sst [smem:[#allocation16_spill]] %s4721_s18  ;;  %s52_s20 = sadd.s32 1, %s4717_s17 }
   0xc   : > { %5529 = sst [smem:[#allocation17_spill]] %s4782_s19  ;;  %s49_s21 = ssub.s32 %s4721_s18, %s4782_s19 }
   0xd   : > { %p5512_p0 = scmp.ne.s32.totalorder %s4717_s17, %s4713_s16  ;;  %p50_p1 = scmp.eq.s32.totalorder %s49_s21, 0 }
   0xe   : > { %p60_p2 = scmp.eq.s32.totalorder %s4721_s18, 0  ;;  %p3909_p4 = scmp.lt.s32.totalorder %s4721_s18, 2 }
   0xf   : > { %s4793_s22 = scalar_select %p50_p1, %s4717_s17, %s52_s20  }
  0x10   : > { %p61_p5 = por %p60_p2, %p5512_p0  ;;  %s180_s23 = sand.u32 1, %s4721_s18  }
  0x11   : > { %5530 = sst [smem:[#allocation18_spill]] %s4793_s22  ;;  %s4800_s24 = sand.u32 1, %s4717_s17  }
  0x12   : > { %s3873_s25 = smul.u32 3072, %s4800_s24  ;;  %p4803_p6 = pnand %p3909_p4, %p61_p5 }
  0x13   : > { %s3822_s27 = smul.u32 384, %s4721_s18  ;;  %s5532_s1 = sld [smem:[#allocation20_spill]] }
  0x14   : > { %s5531_s26 = scalar_select %p4803_p6, 1, 0 }
  0x15   : > { %s184_s5 = scalar_lea.vmem [#allocation5], %s3873_s25  ;;  %s4815_s7 = scalar_lea.sflag [#allocation6], %s180_s23 }
  0x16   : > { %s191_s6 = sshll.u32 %s184_s5, 4  ;;  %p4821_p8 = pneg %p4803_p6  ;;  %s4813_s6 = int_to_ptr.vmem [resolvable:$true] %s191_s6 }
  0x18   : > { %s5533_s9 = scalar_select %p4821_p8, 1, 0 }
  0x19   : > { %s4811_s30 = scalar_lea.hbm %s5532_s1, %s3822_s27  ;;  %s4534_s12 = scalar_lea.hbm %s5532_s1, 98304 }
  0x1a   : > { %s4529_s8 = scalar_lea.hbm %s4811_s30, 49152  ;;  %p4535_p11 = scmp.lt.u32.totalorder %s4811_s30, %s5532_s1 }
  0x1b   : > { %p4530_p7 = scmp.ne.s32.totalorder %s4811_s30, %s4529_s8  ;;  %p4536_p12 = scmp.lt.u32.totalorder %s4534_s12, %s4529_s8 }
  0x1c   : > { %p4538_p1 = scmp.lt.u32.totalorder %s4529_s8, %s4811_s30 }
  0x1d   : > { %p4532_p9 = pnand %p4821_p8, %p4530_p7  ;;  %p4537_p13 = por %p4536_p12, %p4535_p11 }
  0x1f   : > { %p4533_p10 = pneg %p4532_p9  ;;  %p4539_p2 = por %p4538_p1, %p4537_p13 }
  0x21   : > { %p4540_p4 = pnand %p4539_p2, %p4533_p10 }
  0x23   : > { %4543 = shalt.err (!%p4540_p4)
}
  0x24   : > { %s4544_s20 = scalar_lea.vmem %s4813_s6, 49152  ;;  %s4723_s21 = smov [#allocation5]  }
  0x25   : > { %p4545_p5 = scmp.ne.s32.totalorder %s4813_s6, %s4544_s20  ;;  %s4549_s23 = sshll.u32 %s4723_s21, 4  ;;  %s4550_s23 = int_to_ptr.vmem [resolvable:$false] %s4549_s23 }
  0x26   : > { %s4551_s25 = scalar_lea.vmem %s4550_s23, 98304  ;;  %p4552_p3 = scmp.lt.s32.totalorder %s4813_s6, %s4550_s23 }
  0x27   : > { %p4547_p7 = pnand %p4545_p5, %p4821_p8  ;;  %p4553_p0 = scmp.lt.s32.totalorder %s4551_s25, %s4544_s20 }
  0x29   : > { %p4548_p9 = pneg %p4547_p7  ;;  %p4554_p11 = por %p4553_p0, %p4552_p3 }
  0x2b   : > { %p4555_p12 = pnand %p4554_p11, %p4548_p9 }
  0x2d   : > { %4558 = shalt.err (!%p4555_p12)
}
  0x2e   : > { %s4724_s27 = smov 768   ;;  %s4725_s28 = smov 384  }
  0x2f   : > { %s4726_s29 = smov 24   ;;  %s4846_s5 = sadd.s32 4294967295, %s4721_s18  }
  0x30   : > { %3897 = dma.hbm_to_vmem [thread:$0]  (!%p4803_p6), %s4811_s30, 49152, %s4813_s6, %s4815_s7, %s4724_s27, %s4725_s28, %s4726_s29  }
  0x31   : > { %s3416_s8 = sadd.s32 4294967294, %s4721_s18   ;;  %p65_p0 = scmp.ne.s32.totalorder %s4713_s16, %s4709_s15 }
  0x32   : > { %p5514_p3 = scmp.eq.s32.totalorder %s4846_s5, 0  ;;  %p141_p10 = scmp.eq.s32.totalorder %s4846_s5, 1 }
  0x33   : > { %p147_p13 = scmp.eq.s32.totalorder %s3416_s8, 1  ;;  %p3417_p1 = scmp.ge.s32.totalorder %s4721_s18, 1 }
  0x34   : > { %p4856_p2 = por %p5514_p3, %p65_p0  ;;  %p5535_p4 = scmp.ne.s32.totalorder %s4717_s17, %s4713_s16 }
  0x35   : > { %p4867_p7 = por %p147_p13, %p65_p0  ;;  %p154_p9 = scmp.lt.s32.totalorder %s4721_s18, 3 }
  0x36   : > { %s5534_s10 = scalar_select %p4856_p2, 1, 0 }
  0x37   : > { %p4863_p5 = por %p141_p10, %p5535_p4  ;;  %p4872_p11 = pnand %p3417_p1, %p154_p9 }
  0x38   : > { %s5537_s6 = scalar_select %p4867_p7, 1, 0 }
  0x39   : > { %s5536_s30 = scalar_select %p4863_p5, 1, 0 }
  0x3a   : > { %5538 = sst [smem:[#allocation19_spill]] %s5537_s6  ;;  %s4727_s12 = smov [#allocation2]  }
  0x3b   : > { %s5539_s11 = scalar_select %p4872_p11, 1, 0 }
  0x3c   : > { %s166_s13 = sshll.u32 %s4727_s12, 4  ;;  %p3890_p12 = pneg %p4872_p11  ;;  %s167_s13 = int_to_ptr.vmem [resolvable:$true] %s166_s13 }
  0x3d   : > { %s3874_s14 = smul.u32 6, %s4800_s24  ;;  %s4559_s8 = scalar_lea.hbm %s5507_s0, 1024 }
  0x3e   : > { %p4881_p10 = pnand %p3890_p12, %p5514_p3  ;;  %s3823_s21 = smul.u32 96, %s4721_s18 }
  0x3f   : > { %p4560_p0 = scmp.ne.s32.totalorder %s5507_s0, %s4559_s8  ;;  %p4566_p9 = scmp.lt.u32.totalorder %s4559_s8, %s5507_s0 }
  0x40   : > { %s4889_s27 = scalar_lea.hbm %s5509_s2, %s3823_s21  ;;  %p4561_p13 = pneg %p4881_p10 }
  0x42   : > { %p4562_p1 = pnand %p4561_p13, %p4560_p0 }
  0x44   : > { %p4563_p4 = pneg %p4562_p1 }
  0x46   : > { %p4568_p12 = pnand %p4566_p9, %p4563_p4 }
  0x48   : > { %4571 = shalt.err (!%p4568_p12)
}
  0x49   : > { %s4572_s23 = scalar_lea.vmem %s167_s13, 1024  ;;  %p4580_p2 = scmp.lt.s32.totalorder %s167_s13, %s167_s13 }
  0x4a   : > { %p4573_p3 = scmp.ne.s32.totalorder %s167_s13, %s4572_s23  ;;  %p4581_p11 = scmp.lt.s32.totalorder %s4572_s23, %s4572_s23 }
  0x4c   : > { %p4575_p7 = pnand %p4573_p3, %p4561_p13  ;;  %p4582_p6 = por %p4581_p11, %p4580_p2 }
  0x4e   : > { %p4576_p5 = pneg %p4575_p7 }
  0x50   : > { %p4583_p8 = pnand %p4582_p6, %p4576_p5 }
  0x52   : > { %4586 = shalt.err (!%p4583_p8)
}
  0x53   : > { %s4728_s1 = smov 512   ;;  %s4729_s25 = smov 32  }
  0x54   : > { %3893 = dma.hbm_to_vmem [thread:$0]  (!%p4881_p10), %s5507_s0, 1024, %s167_s13, [#allocation3], %s4728_s1, %s4728_s1, %s4729_s25  }
  0x55   : > { %s205_s28 = scalar_lea.vmem [#allocation7], %s3874_s14  ;;  %s4910_s23 = scalar_lea.hbm %s5510_s3, %s3823_s21 }
  0x56   : > { %s213_s29 = sshll.u32 %s205_s28, 4  ;;  %s4914_s19 = scalar_lea.vmem [#allocation8], %s3874_s14  ;;  %s4912_s29 = int_to_ptr.vmem [resolvable:$true] %s213_s29 }
  0x57   : > { %s232_s18 = sshll.u32 %s4914_s19, 4  ;;  %s4587_s6 = scalar_lea.hbm %s4889_s27, 96  ;;  %s233_s18 = int_to_ptr.vmem [resolvable:$true] %s232_s18 }
  0x58   : > { %p4588_p6 = scmp.ne.s32.totalorder %s4889_s27, %s4587_s6  ;;  %p5541_p8 = scmp.ne.s32.totalorder %s5533_s9, 0 }
  0x59   : > { %s4592_s1 = scalar_lea.hbm %s5509_s2, 192  ;;  %p4593_p5 = scmp.lt.u32.totalorder %s4889_s27, %s5509_s2 }
  0x5a   : > { %p4590_p3 = pnand %p4588_p6, %p5541_p8  ;;  %p4594_p7 = scmp.lt.u32.totalorder %s4592_s1, %s4587_s6 }
  0x5b   : > { %p4596_p10 = scmp.lt.u32.totalorder %s4587_s6, %s4889_s27 }
  0x5c   : > { %p4591_p2 = pneg %p4590_p3  ;;  %p4595_p11 = por %p4594_p7, %p4593_p5 }
  0x5e   : > { %p4597_p0 = por %p4596_p10, %p4595_p11 }
  0x60   : > { %p4598_p13 = pnand %p4597_p0, %p4591_p2 }
  0x62   : > { %4601 = shalt.err (!%p4598_p13)
}
  0x63   : > { %s4602_s19 = scalar_lea.vmem %s4912_s29, 96  ;;  %s4730_s14 = smov [#allocation7]  }
  0x64   : > { %p4603_p1 = scmp.ne.s32.totalorder %s4912_s29, %s4602_s19  ;;  %s4607_s21 = sshll.u32 %s4730_s14, 4  ;;  %s4608_s21 = int_to_ptr.vmem [resolvable:$false] %s4607_s21 }
  0x65   : > { %s4609_s22 = scalar_lea.vmem %s4608_s21, 192  ;;  %p4610_p12 = scmp.lt.s32.totalorder %s4912_s29, %s4608_s21 }
  0x66   : > { %p4605_p4 = pnand %p4603_p1, %p5541_p8  ;;  %p4611_p6 = scmp.lt.s32.totalorder %s4609_s22, %s4602_s19 }
  0x68   : > { %p4606_p9 = pneg %p4605_p4  ;;  %p4612_p3 = por %p4611_p6, %p4610_p12 }
  0x6a   : > { %p4613_p5 = pnand %p4612_p3, %p4606_p9 }
  0x6c   : > { %4616 = shalt.err (!%p4613_p5)
}
  0x6d   : > { %p5542_p2 = scmp.ne.s32.totalorder %s5531_s26, 0  ;;  %s221_s6 = scalar_lea.sflag [#allocation9], %s4800_s24 }
  0x6e   : > { %s4617_s28 = scalar_lea.hbm %s4910_s23, 96  ;;  %s4622_s20 = scalar_lea.hbm %s5510_s3, 192 }
  0x6f   : > { %3900 = dma.hbm_to_vmem [thread:$0]  (!%p5542_p2), %s4889_s27, 96, %s4912_s29, %s4815_s7  }
  0x70   : > { %p4618_p7 = scmp.ne.s32.totalorder %s4910_s23, %s4617_s28  ;;  %p4623_p0 = scmp.lt.u32.totalorder %s4910_s23, %s5510_s3 }
  0x71   : > { %p4624_p13 = scmp.lt.u32.totalorder %s4622_s20, %s4617_s28  ;;  %p4626_p4 = scmp.lt.u32.totalorder %s4617_s28, %s4910_s23 }
  0x72   : > { %p4620_p11 = pnand %p4618_p7, %p5541_p8 }
  0x73   : > { %p4625_p1 = por %p4624_p13, %p4623_p0 }
  0x74   : > { %p4621_p10 = pneg %p4620_p11 }
  0x75   : > { %p4627_p9 = por %p4626_p4, %p4625_p1 }
  0x77   : > { %p4628_p12 = pnand %p4627_p9, %p4621_p10 }
  0x79   : > { %4631 = shalt.err (!%p4628_p12)
}
  0x7a   : > { %s4632_s24 = scalar_lea.vmem %s233_s18, 96  ;;  %s4731_s7 = smov [#allocation8]  }
  0x7b   : > { %p4633_p6 = scmp.ne.s32.totalorder %s233_s18, %s4632_s24  ;;  %s4637_s27 = sshll.u32 %s4731_s7, 4  ;;  %s4638_s27 = int_to_ptr.vmem [resolvable:$false] %s4637_s27 }
  0x7c   : > { %s4639_s29 = scalar_lea.vmem %s4638_s27, 192  ;;  %p4640_p7 = scmp.lt.s32.totalorder %s233_s18, %s4638_s27 }
  0x7d   : > { %p4635_p3 = pnand %p4633_p6, %p5541_p8  ;;  %p4641_p11 = scmp.lt.s32.totalorder %s4639_s29, %s4632_s24 }
  0x7f   : > { %p4636_p5 = pneg %p4635_p3  ;;  %p4642_p2 = por %p4641_p11, %p4640_p7 }
  0x81   : > { %p4643_p0 = pnand %p4642_p2, %p4636_p5 }
  0x83   : > { %4646 = shalt.err (!%p4643_p0)
}
  0x84   : > { %p5543_p13 = scmp.ne.s32.totalorder %s5531_s26, 0  ;;  %p5544_p10 = scmp.ne.s32.totalorder %s5539_s11, 0 }
  0x85   : > { %p5545_p1 = scmp.eq.s32.totalorder (!%p5544_p10), %s4846_s5, 0 }
  0x86   : > { %3903 = dma.hbm_to_vmem [thread:$0]  (!%p5543_p13), %s4910_s23, 96, %s233_s18, %s221_s6  }
  0x87   : > { %241 = sbr.rel (%p5544_p10) target bundleno = 781 (0x30d), region = 36 }
  0x8e   : > { %4692 = dma.done.wait (%p5545_p1), [#allocation3], 1024   ;;  %p5546_p8 = pmov %p5545_p1 }
  0x8f   : > { %s247_s9 = sand.u32 1, %s4846_s5   ;;  %s4965_s25 = sand.u32 1, %s4713_s16  }
  0x90   : > { %4694 = vsyncadd (%p5546_p8), [#allocation3], 4294966272  ;;  %s3876_s17 = smul.u32 3072, %s4965_s25  ;;  %s248_s26 = scalar_lea.sflag [#allocation6], %s247_s9 }
  0x91   : > { %p5547_p2 = scmp.ne.s32.totalorder %s5534_s10, 0 }
  0x92   : > { %s4968_s19 = scalar_lea.vmem [#allocation5], %s3876_s17 }
  0x93   : > { %4696 = dma.done.wait (%p5547_p2), %s248_s26, 49248  }
  0x94   : > { %4698 = vsyncadd (%p5547_p2), %s248_s26, 4294918048  ;;  %s3877_s18 = smul.u32 6, %s4965_s25  ;;  %s266_s23 = scalar_lea.sflag [#allocation9], %s4965_s25 }
  0x96   : > { %s4975_s11 = scalar_lea.vmem [#allocation7], %s3877_s18  ;;  %s4978_s14 = scalar_lea.vmem [#allocation8], %s3877_s18 }
  0x97   : > { %4700 = dma.done.wait (%p5547_p2), %s266_s23, 96  }
  0x98   : > { %4702 = vsyncadd (%p5547_p2), %s266_s23, 4294967200  ;;  %v3953_v0 = vld [vmem:[%s4968_s19 + $0x4] ss:$24 sps:$4 sm:$0xff]   ;;  %v3957_v2 = vld [vmem:[%s4968_s19] ss:$24 sps:$4 sm:$0xff]   ;;  %s3425_s10 = sshll.u32 %s4965_s25, 4 }
  0x99   : > { %v3955_v1 = vld [vmem:[%s4968_s19 + $0x604] ss:$24 sps:$4 sm:$0xff]   ;;  %2691 = vmatprep.subr.bf16.mxu1 %v3953_v0  ;;  %v3958_v3 = vld [vmem:[%s4968_s19 + $0x600] ss:$24 sps:$4 sm:$0xff]   ;;  %v3959_v4 = vld [vmem:[%s4968_s19 + $0x34] ss:$24 sps:$4 sm:$0xff]  }
  0x9a   : > { %2777 = vmatprep.subr.bf16.mxu0 %v3955_v1  ;;  %2692 = vmatpush1.bf16.msra.mxu1 %v3957_v2  ;;  %v3961_v5 = vld [vmem:[%s4968_s19 + $0x634] ss:$24 sps:$4 sm:$0xff]   ;;  %v3963_v6 = vld [vmem:[%s4968_s19 + $0x30] ss:$24 sps:$4 sm:$0xff]   ;;  %v3965_v8 = vld [vmem:[%s4968_s19 + $0x64] ss:$24 sps:$4 sm:$0xff]  }
  0x9b   : > { %2778 = vmatpush1.bf16.msra.mxu0 %v3958_v3  ;;  %2693 = vmatprep.subr.bf16.mxu1 %v3959_v4  ;;  %v3964_v7 = vld [vmem:[%s4968_s19 + $0x630] ss:$24 sps:$4 sm:$0xff]   ;;  %v3967_v9 = vld [vmem:[%s4968_s19 + $0x664] ss:$24 sps:$4 sm:$0xff]   ;;  %v3969_v10 = vld [vmem:[%s4968_s19 + $0x60] ss:$24 sps:$4 sm:$0xff]  }
  0x9c   : > { %2779 = vmatprep.subr.bf16.mxu0 %v3961_v5  ;;  %v3970_v11 = vld [vmem:[%s4968_s19 + $0x660] ss:$24 sps:$4 sm:$0xff]   ;;  %v3971_v12 = vld [vmem:[%s4968_s19 + $0x94] ss:$24 sps:$4 sm:$0xff]   ;;  %v3975_v14 = vld [vmem:[%s4968_s19 + $0x90] ss:$24 sps:$4 sm:$0xff]  }
  0x9d   : > { %v3973_v13 = vld [vmem:[%s4968_s19 + $0x694] ss:$24 sps:$4 sm:$0xff]   ;;  %v3976_v15 = vld [vmem:[%s4968_s19 + $0x690] ss:$24 sps:$4 sm:$0xff]   ;;  %v3977_v16 = vld [vmem:[%s4968_s19 + $0xc4] ss:$24 sps:$4 sm:$0xff]  }
  0x9e   : > { %2694 = vmatpush1.bf16.msra.mxu1 %v3963_v6  ;;  %v3979_v17 = vld [vmem:[%s4968_s19 + $0x6c4] ss:$24 sps:$4 sm:$0xff]   ;;  %v3981_v18 = vld [vmem:[%s4968_s19 + $0xc0] ss:$24 sps:$4 sm:$0xff]   ;;  %v3983_v20 = vld [vmem:[%s4968_s19 + $0xf4] ss:$24 sps:$4 sm:$0xff]  }
  0x9f   : > { %2780 = vmatpush1.bf16.msra.mxu0 %v3964_v7  ;;  %2695 = vmatprep.subr.bf16.mxu1 %v3965_v8  ;;  %v3982_v19 = vld [vmem:[%s4968_s19 + $0x6c0] ss:$24 sps:$4 sm:$0xff]   ;;  %v3985_v21 = vld [vmem:[%s4968_s19 + $0x6f4] ss:$24 sps:$4 sm:$0xff]   ;;  %v3987_v22 = vld [vmem:[%s4968_s19 + $0xf0] ss:$24 sps:$4 sm:$0xff]  }
  0xa0   : > { %2781 = vmatprep.subr.bf16.mxu0 %v3967_v9  ;;  %v3988_v23 = vld [vmem:[%s4968_s19 + $0x6f0] ss:$24 sps:$4 sm:$0xff]   ;;  %v3989_v24 = vld [vmem:[%s4968_s19 + $0x124] ss:$24 sps:$4 sm:$0xff]   ;;  %v3993_v26 = vld [vmem:[%s4968_s19 + $0x120] ss:$24 sps:$4 sm:$0xff]  }
  0xa1   : > { %v3991_v25 = vld [vmem:[%s4968_s19 + $0x724] ss:$24 sps:$4 sm:$0xff]   ;;  %v3994_v27 = vld [vmem:[%s4968_s19 + $0x720] ss:$24 sps:$4 sm:$0xff]   ;;  %v3995_v28 = vld [vmem:[%s4968_s19 + $0x154] ss:$24 sps:$4 sm:$0xff]  }
  0xa2   : > { %2696 = vmatpush1.bf16.msra.mxu1 %v3969_v10  ;;  %v3997_v29 = vld [vmem:[%s4968_s19 + $0x754] ss:$24 sps:$4 sm:$0xff]   ;;  %v3999_v30 = vld [vmem:[%s4968_s19 + $0x150] ss:$24 sps:$4 sm:$0xff]   ;;  %v4001_v32 = vld [vmem:[%s4968_s19 + $0x184] ss:$24 sps:$4 sm:$0xff]  }
  0xa3   : > { %2782 = vmatpush1.bf16.msra.mxu0 %v3970_v11  ;;  %2697 = vmatprep.subr.bf16.mxu1 %v3971_v12  ;;  %v4000_v31 = vld [vmem:[%s4968_s19 + $0x750] ss:$24 sps:$4 sm:$0xff]   ;;  %v4003_v33 = vld [vmem:[%s4968_s19 + $0x784] ss:$24 sps:$4 sm:$0xff]   ;;  %v4005_v34 = vld [vmem:[%s4968_s19 + $0x180] ss:$24 sps:$4 sm:$0xff]  }
  0xa4   : > { %2783 = vmatprep.subr.bf16.mxu0 %v3973_v13  ;;  %v4006_v35 = vld [vmem:[%s4968_s19 + $0x780] ss:$24 sps:$4 sm:$0xff]   ;;  %v4007_v36 = vld [vmem:[%s4968_s19 + $0x1b4] ss:$24 sps:$4 sm:$0xff]   ;;  %v4011_v38 = vld [vmem:[%s4968_s19 + $0x1b0] ss:$24 sps:$4 sm:$0xff]  }
  0xa5   : > { %v4009_v37 = vld [vmem:[%s4968_s19 + $0x7b4] ss:$24 sps:$4 sm:$0xff]   ;;  %v4012_v39 = vld [vmem:[%s4968_s19 + $0x7b0] ss:$24 sps:$4 sm:$0xff]   ;;  %v4013_v40 = vld [vmem:[%s4968_s19 + $0x1e4] ss:$24 sps:$4 sm:$0xff]  }
  0xa6   : > { %2698 = vmatpush1.bf16.msra.mxu1 %v3975_v14  ;;  %v4015_v41 = vld [vmem:[%s4968_s19 + $0x7e4] ss:$24 sps:$4 sm:$0xff]   ;;  %v4017_v42 = vld [vmem:[%s4968_s19 + $0x1e0] ss:$24 sps:$4 sm:$0xff]   ;;  %v4019_v44 = vld [vmem:[%s4968_s19 + $0x214] ss:$24 sps:$4 sm:$0xff]  }
  0xa7   : > { %2784 = vmatpush1.bf16.msra.mxu0 %v3976_v15  ;;  %2699 = vmatprep.subr.bf16.mxu1 %v3977_v16  ;;  %v4018_v43 = vld [vmem:[%s4968_s19 + $0x7e0] ss:$24 sps:$4 sm:$0xff]   ;;  %v4021_v45 = vld [vmem:[%s4968_s19 + $0x814] ss:$24 sps:$4 sm:$0xff]   ;;  %v4023_v46 = vld [vmem:[%s4968_s19 + $0x210] ss:$24 sps:$4 sm:$0xff]  }
  0xa8   : > { %2785 = vmatprep.subr.bf16.mxu0 %v3979_v17  ;;  %v4024_v47 = vld [vmem:[%s4968_s19 + $0x810] ss:$24 sps:$4 sm:$0xff]   ;;  %v307_v48 = vld [vmem:[#allocation2] sm:$0xff]  ;;  %v4031_v58 = vld [vmem:[%s4968_s19 + $0x274] ss:$24 sps:$4 sm:$0xff]   ;;  %s303_s21 = scalar_lea.vmem [#allocation10], %s3425_s10 }
  0xa9   : > { %v311_v49 = vld [vmem:[#allocation2 + $0x20] sm:$0xff]  ;;  %v309_v53 = vld [vmem:[#allocation2 + $0x10] sm:$0xff]  ;;  %s3288_s22 = sshll.u32 %s303_s21, 4  ;;  %s3819_s6 = sshll.u32 %s4846_s5, 7  ;;  %s5458_s22 = int_to_ptr.vmem [resolvable:$true] %s3288_s22 }
  0xaa   : > { %2700 = vmatpush1.bf16.msra.mxu1 %v3981_v18  ;;  %v4025_v50 = vld [vmem:[%s4968_s19 + $0x244] ss:$24 sps:$4 sm:$0xff]   ;;  %v5034_v52 = vcombine.high %v307_v48, %v311_v49  ;;  %v313_v54 = vld [vmem:[#allocation2 + $0x30] sm:$0xff]  ;;  %v4029_v56 = vld [vmem:[%s4968_s19 + $0x240] ss:$24 sps:$4 sm:$0xff]   ;;  %v5058_v10 = vcombine.low %v307_v48, %v311_v49  ;;  %s5463_s12 = scalar_lea.hbm %s5511_s4, %s3819_s6  ;;  %s3276_s20 = scalar_lea.sflag [#allocation4], %s4965_s25 }
  0xab   : > { %2786 = vmatpush1.bf16.msra.mxu0 %v3982_v19  ;;  %2701 = vmatprep.subr.bf16.mxu1 %v3983_v20  ;;  %v4027_v51 = vld [vmem:[%s4968_s19 + $0x844] ss:$24 sps:$4 sm:$0xff]   ;;  %v5037_v55 = vcombine.high %v309_v53, %v313_v54  ;;  %v4030_v57 = vld [vmem:[%s4968_s19 + $0x840] ss:$24 sps:$4 sm:$0xff]   ;;  %v4033_v59 = vld [vmem:[%s4968_s19 + $0x874] ss:$24 sps:$4 sm:$0xff]   ;;  %v5060_v11 = vcombine.low %v309_v53, %v313_v54 }
  0xac   : > { %2787 = vmatprep.subr.bf16.mxu0 %v3985_v21  ;;  %2723 = vmatprep.mubr.bf16.mxu1 %v5034_v52  ;;  %v4035_v60 = vld [vmem:[%s4968_s19 + $0x270] ss:$24 sps:$4 sm:$0xff]   ;;  %v4037_v62 = vld [vmem:[%s4968_s19 + $0x2a4] ss:$24 sps:$4 sm:$0xff]   ;;  %v4041_v0 = vld [vmem:[%s4968_s19 + $0x2a0] ss:$24 sps:$4 sm:$0xff]  }
  0xad   : > { %2809 = vmatprep.mubr.bf16.mxu0 %v5037_v55  ;;  %v4036_v61 = vld [vmem:[%s4968_s19 + $0x870] ss:$24 sps:$4 sm:$0xff]   ;;  %v4039_v63 = vld [vmem:[%s4968_s19 + $0x8a4] ss:$24 sps:$4 sm:$0xff]   ;;  %v4042_v1 = vld [vmem:[%s4968_s19 + $0x8a0] ss:$24 sps:$4 sm:$0xff]  }
  0xae   : > { %2702 = vmatpush1.bf16.msra.mxu1 %v3987_v22  ;;  %v4043_v2 = vld [vmem:[%s4968_s19 + $0x2d4] ss:$24 sps:$4 sm:$0xff]   ;;  %v4047_v4 = vld [vmem:[%s4968_s19 + $0x2d0] ss:$24 sps:$4 sm:$0xff]   ;;  %v4051_v6 = vld [vmem:[%s4968_s19 + $0x304] ss:$24 sps:$4 sm:$0xff]  }
  0xaf   : > { %2788 = vmatpush1.bf16.msra.mxu0 %v3988_v23  ;;  %2703 = vmatprep.subr.bf16.mxu1 %v3989_v24  ;;  %v4045_v3 = vld [vmem:[%s4968_s19 + $0x8d4] ss:$24 sps:$4 sm:$0xff]   ;;  %v4048_v5 = vld [vmem:[%s4968_s19 + $0x8d0] ss:$24 sps:$4 sm:$0xff]   ;;  %v4054_v7 = vld [vmem:[%s4968_s19 + $0x904] ss:$24 sps:$4 sm:$0xff]  }
  0xb0   : > { %2789 = vmatprep.subr.bf16.mxu0 %v3991_v25  ;;  %v4049_v8 = vld [vmem:[%s4968_s19 + $0x300] ss:$24 sps:$4 sm:$0xff]   ;;  %v4057_v12 = vld [vmem:[%s4968_s19 + $0x334] ss:$24 sps:$4 sm:$0xff]   ;;  %v4055_v14 = vld [vmem:[%s4968_s19 + $0x330] ss:$24 sps:$4 sm:$0xff]  }
  0xb1   : > { %v4052_v9 = vld [vmem:[%s4968_s19 + $0x900] ss:$24 sps:$4 sm:$0xff]   ;;  %v4060_v13 = vld [vmem:[%s4968_s19 + $0x934] ss:$24 sps:$4 sm:$0xff]   ;;  %v4058_v15 = vld [vmem:[%s4968_s19 + $0x930] ss:$24 sps:$4 sm:$0xff]  }
  0xb2   : > { %2704 = vmatpush1.bf16.msra.mxu1 %v3993_v26  ;;  %v4063_v16 = vld [vmem:[%s4968_s19 + $0x364] ss:$24 sps:$4 sm:$0xff]   ;;  %v4061_v18 = vld [vmem:[%s4968_s19 + $0x360] ss:$24 sps:$4 sm:$0xff]   ;;  %v4069_v20 = vld [vmem:[%s4968_s19 + $0x394] ss:$24 sps:$4 sm:$0xff]  }
  0xb3   : > { %2790 = vmatpush1.bf16.msra.mxu0 %v3994_v27  ;;  %2705 = vmatprep.subr.bf16.mxu1 %v3995_v28  ;;  %v4066_v17 = vld [vmem:[%s4968_s19 + $0x964] ss:$24 sps:$4 sm:$0xff]   ;;  %v4064_v19 = vld [vmem:[%s4968_s19 + $0x960] ss:$24 sps:$4 sm:$0xff]   ;;  %v4072_v21 = vld [vmem:[%s4968_s19 + $0x994] ss:$24 sps:$4 sm:$0xff]  }
  0xb4   : > { %2791 = vmatprep.subr.bf16.mxu0 %v3997_v29  ;;  %v4067_v22 = vld [vmem:[%s4968_s19 + $0x390] ss:$24 sps:$4 sm:$0xff]   ;;  %v4075_v24 = vld [vmem:[%s4968_s19 + $0x3c4] ss:$24 sps:$4 sm:$0xff]   ;;  %v4073_v26 = vld [vmem:[%s4968_s19 + $0x3c0] ss:$24 sps:$4 sm:$0xff]  }
  0xb5   : > { %v4070_v23 = vld [vmem:[%s4968_s19 + $0x990] ss:$24 sps:$4 sm:$0xff]   ;;  %v4078_v25 = vld [vmem:[%s4968_s19 + $0x9c4] ss:$24 sps:$4 sm:$0xff]   ;;  %v4076_v27 = vld [vmem:[%s4968_s19 + $0x9c0] ss:$24 sps:$4 sm:$0xff]  }
  0xb6   : > { %2706 = vmatpush1.bf16.msra.mxu1 %v3999_v30  ;;  %v4081_v28 = vld [vmem:[%s4968_s19 + $0x3f4] ss:$24 sps:$4 sm:$0xff]   ;;  %v4079_v30 = vld [vmem:[%s4968_s19 + $0x3f0] ss:$24 sps:$4 sm:$0xff]   ;;  %v4097_v48 = vld [vmem:[%s4968_s19 + $0x480] ss:$24 sps:$4 sm:$0xff]  }
  0xb7   : > { %2792 = vmatpush1.bf16.msra.mxu0 %v4000_v31  ;;  %2707 = vmatprep.subr.bf16.mxu1 %v4001_v32  ;;  %v4084_v29 = vld [vmem:[%s4968_s19 + $0x9f4] ss:$24 sps:$4 sm:$0xff]   ;;  %v4082_v31 = vld [vmem:[%s4968_s19 + $0x9f0] ss:$24 sps:$4 sm:$0xff]   ;;  %v4087_v32 = vld [vmem:[%s4968_s19 + $0x424] ss:$24 sps:$4 sm:$0xff]  }
  0xb8   : > { %2793 = vmatprep.subr.bf16.mxu0 %v4003_v33  ;;  %v4090_v33 = vld [vmem:[%s4968_s19 + $0xa24] ss:$24 sps:$4 sm:$0xff]   ;;  %v4100_v49 = vld [vmem:[%s4968_s19 + $0xa80] ss:$24 sps:$4 sm:$0xff]   ;;  %v4103_v53 = vld [vmem:[%s4968_s19 + $0x4b0] ss:$24 sps:$4 sm:$0xff]  }
  0xb9   : > { %v4106_v54 = vld [vmem:[%s4968_s19 + $0xab0] ss:$24 sps:$4 sm:$0xff]   ;;  %s4647_s13 = scalar_lea.vmem %s5458_s22, 256  ;;  %p5548_p9 = scmp.ne.s32.totalorder %s5536_s30, 0 }
  0xba   : > { %2708 = vmatpush1.bf16.msra.mxu1 %v4005_v34  ;;  %v4085_v34 = vld [vmem:[%s4968_s19 + $0x420] ss:$24 sps:$4 sm:$0xff]   ;;  %p4648_p4 = scmp.ne.s32.totalorder %s5458_s22, %s4647_s13  ;;  %s4732_s5 = smov [#allocation10]  }
  0xbb   : > { %2794 = vmatpush1.bf16.msra.mxu0 %v4006_v35  ;;  %2709 = vmatprep.subr.bf16.mxu1 %v4007_v36  ;;  %v4088_v35 = vld [vmem:[%s4968_s19 + $0xa20] ss:$24 sps:$4 sm:$0xff]   ;;  %v5088_v36 = vld [vmem:[#allocation2 + $0x8] sm:$0xff]  ;;  %s4651_s1 = sshll.u32 %s4732_s5, 4  ;;  %s4652_s1 = int_to_ptr.vmem [resolvable:$false] %s4651_s1 }
  0xbc   : > { %2795 = vmatprep.subr.bf16.mxu0 %v4009_v37  ;;  %v5090_v37 = vld [vmem:[#allocation2 + $0x28] sm:$0xff]  ;;  %p4649_p12 = pnand %p4648_p4, %p5548_p9  ;;  %s4653_s24 = scalar_lea.vmem %s4652_s1, 512 }
  0xbd   : > { %p4654_p3 = scmp.lt.s32.totalorder %s5458_s22, %s4652_s1  ;;  %p4655_p5 = scmp.lt.s32.totalorder %s4653_s24, %s4647_s13 }
  0xbe   : > { %2710 = vmatpush1.bf16.msra.mxu1 %v4011_v38  ;;  %v5092_v38 = vld [vmem:[#allocation2 + $0x18] sm:$0xff]  ;;  %p4650_p6 = pneg %p4649_p12 }
  0xbf   : > { %2796 = vmatpush1.bf16.msra.mxu0 %v4012_v39  ;;  %2711 = vmatprep.subr.bf16.mxu1 %v4013_v40  ;;  %v5094_v39 = vld [vmem:[#allocation2 + $0x38] sm:$0xff]  ;;  %v4093_v40 = vld [vmem:[%s4968_s19 + $0x454] ss:$24 sps:$4 sm:$0xff]   ;;  %p4656_p7 = por %p4655_p5, %p4654_p3 }
  0xc0   : > { %2797 = vmatprep.subr.bf16.mxu0 %v4015_v41  ;;  %v5099_v41 = vcombine.high %v5088_v36, %v5090_v37 }
  0xc1   : > { %p4657_p11 = pnand %p4656_p7, %p4650_p6 }
  0xc2   : > { %2712 = vmatpush1.bf16.msra.mxu1 %v4017_v42  ;;  %v4096_v42 = vld [vmem:[%s4968_s19 + $0xa54] ss:$24 sps:$4 sm:$0xff]  }
  0xc3   : > { %2798 = vmatpush1.bf16.msra.mxu0 %v4018_v43  ;;  %2713 = vmatprep.subr.bf16.mxu1 %v4019_v44  ;;  %v5104_v43 = vcombine.high %v5092_v38, %v5094_v39  ;;  %v4091_v44 = vld [vmem:[%s4968_s19 + $0x450] ss:$24 sps:$4 sm:$0xff]  }
  0xc4   : > { %2799 = vmatprep.subr.bf16.mxu0 %v4021_v45  ;;  %v4094_v45 = vld [vmem:[%s4968_s19 + $0xa50] ss:$24 sps:$4 sm:$0xff]  }
  0xc6   : > { %2714 = vmatpush1.bf16.msra.mxu1 %v4023_v46  ;;  %v4099_v46 = vld [vmem:[%s4968_s19 + $0x484] ss:$24 sps:$4 sm:$0xff]  }
  0xc7   : > { %2800 = vmatpush1.bf16.msra.mxu0 %v4024_v47  ;;  %2715 = vmatprep.subr.bf16.mxu1 %v4025_v50  ;;  %v4102_v47 = vld [vmem:[%s4968_s19 + $0xa84] ss:$24 sps:$4 sm:$0xff]   ;;  %v4105_v50 = vld [vmem:[%s4968_s19 + $0x4b4] ss:$24 sps:$4 sm:$0xff]  }
  0xc8   : > { %2801 = vmatprep.subr.bf16.mxu0 %v4027_v51  ;;  %v4108_v51 = vld [vmem:[%s4968_s19 + $0xab4] ss:$24 sps:$4 sm:$0xff]  }
  0xca   : > { %2716 = vmatpush1.bf16.msra.mxu1 %v4029_v56  ;;  %v4111_v56 = vld [vmem:[%s4968_s19 + $0x4e4] ss:$24 sps:$4 sm:$0xff]  }
  0xcb   : > { %2802 = vmatpush1.bf16.msra.mxu0 %v4030_v57  ;;  %2717 = vmatprep.subr.bf16.mxu1 %v4031_v58  ;;  %v4114_v57 = vld [vmem:[%s4968_s19 + $0xae4] ss:$24 sps:$4 sm:$0xff]   ;;  %v4109_v58 = vld [vmem:[%s4968_s19 + $0x4e0] ss:$24 sps:$4 sm:$0xff]  }
  0xcc   : > { %2803 = vmatprep.subr.bf16.mxu0 %v4033_v59  ;;  %v4112_v59 = vld [vmem:[%s4968_s19 + $0xae0] ss:$24 sps:$4 sm:$0xff]  }
  0xce   : > { %2718 = vmatpush1.bf16.msra.mxu1 %v4035_v60  ;;  %v4117_v60 = vld [vmem:[%s4968_s19 + $0x514] ss:$24 sps:$4 sm:$0xff]  }
  0xcf   : > { %2804 = vmatpush1.bf16.msra.mxu0 %v4036_v61  ;;  %2719 = vmatprep.subr.bf16.mxu1 %v4037_v62  ;;  %v4120_v61 = vld [vmem:[%s4968_s19 + $0xb14] ss:$24 sps:$4 sm:$0xff]   ;;  %v4115_v62 = vld [vmem:[%s4968_s19 + $0x510] ss:$24 sps:$4 sm:$0xff]  }
  0xd0   : > { %2805 = vmatprep.subr.bf16.mxu0 %v4039_v63  ;;  %v4118_v63 = vld [vmem:[%s4968_s19 + $0xb10] ss:$24 sps:$4 sm:$0xff]  }
  0xd2   : > { %2720 = vmatpush1.bf16.msra.mxu1 %v4041_v0  ;;  %v4123_v0 = vld [vmem:[%s4968_s19 + $0x544] ss:$24 sps:$4 sm:$0xff]  }
  0xd3   : > { %2806 = vmatpush1.bf16.msra.mxu0 %v4042_v1  ;;  %2721 = vmatprep.subr.bf16.mxu1 %v4043_v2  ;;  %v4126_v1 = vld [vmem:[%s4968_s19 + $0xb44] ss:$24 sps:$4 sm:$0xff]   ;;  %v4121_v2 = vld [vmem:[%s4968_s19 + $0x540] ss:$24 sps:$4 sm:$0xff]  }
  0xd4   : > { %2807 = vmatprep.subr.bf16.mxu0 %v4045_v3  ;;  %v4124_v3 = vld [vmem:[%s4968_s19 + $0xb40] ss:$24 sps:$4 sm:$0xff]  }
  0xd6   : > { %2722 = vmatpush1.bf16.msra.mxu1 %v4047_v4  ;;  %v4129_v4 = vld [vmem:[%s4968_s19 + $0x574] ss:$24 sps:$4 sm:$0xff]  }
  0xd7   : > { %2808 = vmatpush1.bf16.msra.mxu0 %v4048_v5  ;;  %2734 = vmatprep.subr.bf16.mxu1 %v4051_v6  ;;  %v4132_v5 = vld [vmem:[%s4968_s19 + $0xb74] ss:$24 sps:$4 sm:$0xff]   ;;  %v4127_v6 = vld [vmem:[%s4968_s19 + $0x570] ss:$24 sps:$4 sm:$0xff]  }
  0xd8   : > { %2820 = vmatprep.subr.bf16.mxu0 %v4054_v7  ;;  %v4130_v7 = vld [vmem:[%s4968_s19 + $0xb70] ss:$24 sps:$4 sm:$0xff]  }
  0xd9   : > { %2724 = vmatmul.mubr.bf16.vlgmr.msra.gmra.mrb[0].mxu1 %v5058_v10 }
  0xda   : > { %2810 = vmatmul.mubr.bf16.vlgmr.msra.gmra.mrb[0].mxu0 %v5060_v11  ;;  %2735 = vmatpush1.bf16.msra.mxu1 %v4049_v8  ;;  %v4135_v8 = vld [vmem:[%s4968_s19 + $0x5a4] ss:$24 sps:$4 sm:$0xff]  }
  0xdb   : > { %2821 = vmatpush1.bf16.msra.mxu0 %v4052_v9  ;;  %2736 = vmatprep.subr.bf16.mxu1 %v4057_v12  ;;  %v4138_v9 = vld [vmem:[%s4968_s19 + $0xba4] ss:$24 sps:$4 sm:$0xff]   ;;  %v4133_v12 = vld [vmem:[%s4968_s19 + $0x5a0] ss:$24 sps:$4 sm:$0xff]  }
  0xdc   : > { %2822 = vmatprep.subr.bf16.mxu0 %v4060_v13  ;;  %2766 = vmatprep.mubr.bf16.mxu1 %v5099_v41  ;;  %v4136_v13 = vld [vmem:[%s4968_s19 + $0xba0] ss:$24 sps:$4 sm:$0xff]  }
  0xdd   : > { %2852 = vmatprep.mubr.bf16.mxu0 %v5104_v43 }
  0xde   : > { %2737 = vmatpush1.bf16.msra.mxu1 %v4055_v14  ;;  %v4141_v14 = vld [vmem:[%s4968_s19 + $0x5d4] ss:$24 sps:$4 sm:$0xff]  }
  0xdf   : > { %2823 = vmatpush1.bf16.msra.mxu0 %v4058_v15  ;;  %2738 = vmatprep.subr.bf16.mxu1 %v4063_v16  ;;  %v4144_v15 = vld [vmem:[%s4968_s19 + $0xbd4] ss:$24 sps:$4 sm:$0xff]   ;;  %v4139_v16 = vld [vmem:[%s4968_s19 + $0x5d0] ss:$24 sps:$4 sm:$0xff]  }
  0xe0   : > { %2824 = vmatprep.subr.bf16.mxu0 %v4066_v17  ;;  %v4142_v17 = vld [vmem:[%s4968_s19 + $0xbd0] ss:$24 sps:$4 sm:$0xff]  }
  0xe2   : > { %2739 = vmatpush1.bf16.msra.mxu1 %v4061_v18  ;;  %v4147_v18 = vld [vmem:[%s4968_s19 + $0xc] ss:$24 sps:$4 sm:$0xff]  }
  0xe3   : > { %2825 = vmatpush1.bf16.msra.mxu0 %v4064_v19  ;;  %2740 = vmatprep.subr.bf16.mxu1 %v4069_v20  ;;  %v4150_v19 = vld [vmem:[%s4968_s19 + $0x14] ss:$24 sps:$4 sm:$0xff]   ;;  %v5146_v20 = vcombine.low %v5088_v36, %v5090_v37  ;;  %v4169_v37 = vld [vmem:[%s4968_s19 + $0xc8] ss:$24 sps:$4 sm:$0xff]  }
  0xe4   : > { %2826 = vmatprep.subr.bf16.mxu0 %v4072_v21  ;;  %v5150_v21 = vcombine.low %v5092_v38, %v5094_v39  ;;  %v4174_v36 = vld [vmem:[%s4968_s19 + $0xd4] ss:$24 sps:$4 sm:$0xff]   ;;  %v4172_v38 = vld [vmem:[%s4968_s19 + $0xd0] ss:$24 sps:$4 sm:$0xff]  }
  0xe5   : > { %v4177_v39 = vld [vmem:[%s4968_s19 + $0xfc] ss:$24 sps:$4 sm:$0xff]  }
  0xe6   : > { %2741 = vmatpush1.bf16.msra.mxu1 %v4067_v22  ;;  %v4145_v22 = vld [vmem:[%s4968_s19 + $0x8] ss:$24 sps:$4 sm:$0xff]  }
  0xe7   : > { %2827 = vmatpush1.bf16.msra.mxu0 %v4070_v23  ;;  %2742 = vmatprep.subr.bf16.mxu1 %v4075_v24  ;;  %v4148_v23 = vld [vmem:[%s4968_s19 + $0x10] ss:$24 sps:$4 sm:$0xff]   ;;  %v4153_v24 = vld [vmem:[%s4968_s19 + $0x3c] ss:$24 sps:$4 sm:$0xff]  }
  0xe8   : > { %2828 = vmatprep.subr.bf16.mxu0 %v4078_v25  ;;  %v4156_v25 = vld [vmem:[%s4968_s19 + $0x44] ss:$24 sps:$4 sm:$0xff]  }
  0xea   : > { %2743 = vmatpush1.bf16.msra.mxu1 %v4073_v26  ;;  %v4151_v26 = vld [vmem:[%s4968_s19 + $0x38] ss:$24 sps:$4 sm:$0xff]  }
  0xeb   : > { %2829 = vmatpush1.bf16.msra.mxu0 %v4076_v27  ;;  %2744 = vmatprep.subr.bf16.mxu1 %v4081_v28  ;;  %v4154_v27 = vld [vmem:[%s4968_s19 + $0x40] ss:$24 sps:$4 sm:$0xff]   ;;  %v4159_v28 = vld [vmem:[%s4968_s19 + $0x6c] ss:$24 sps:$4 sm:$0xff]  }
  0xec   : > { %2830 = vmatprep.subr.bf16.mxu0 %v4084_v29  ;;  %v4162_v29 = vld [vmem:[%s4968_s19 + $0x74] ss:$24 sps:$4 sm:$0xff]  }
  0xee   : > { %2745 = vmatpush1.bf16.msra.mxu1 %v4079_v30  ;;  %v4157_v30 = vld [vmem:[%s4968_s19 + $0x68] ss:$24 sps:$4 sm:$0xff]  }
  0xef   : > { %2831 = vmatpush1.bf16.msra.mxu0 %v4082_v31  ;;  %2746 = vmatprep.subr.bf16.mxu1 %v4087_v32  ;;  %v4160_v31 = vld [vmem:[%s4968_s19 + $0x70] ss:$24 sps:$4 sm:$0xff]   ;;  %v4165_v32 = vld [vmem:[%s4968_s19 + $0x9c] ss:$24 sps:$4 sm:$0xff]  }
  0xf0   : > { %2832 = vmatprep.subr.bf16.mxu0 %v4090_v33  ;;  %v4168_v33 = vld [vmem:[%s4968_s19 + $0xa4] ss:$24 sps:$4 sm:$0xff]  }
  0xf2   : > { %2747 = vmatpush1.bf16.msra.mxu1 %v4085_v34  ;;  %v4163_v34 = vld [vmem:[%s4968_s19 + $0x98] ss:$24 sps:$4 sm:$0xff]  }
  0xf3   : > { %2833 = vmatpush1.bf16.msra.mxu0 %v4088_v35  ;;  %2748 = vmatprep.subr.bf16.mxu1 %v4093_v40  ;;  %v4166_v35 = vld [vmem:[%s4968_s19 + $0xa0] ss:$24 sps:$4 sm:$0xff]   ;;  %v4180_v40 = vld [vmem:[%s4968_s19 + $0x104] ss:$24 sps:$4 sm:$0xff]  }
  0xf4   : > { %2834 = vmatprep.subr.bf16.mxu0 %v4096_v42  ;;  %v4175_v42 = vld [vmem:[%s4968_s19 + $0xf8] ss:$24 sps:$4 sm:$0xff]  }
  0xf6   : > { %2749 = vmatpush1.bf16.msra.mxu1 %v4091_v44  ;;  %v4178_v44 = vld [vmem:[%s4968_s19 + $0x100] ss:$24 sps:$4 sm:$0xff]  }
  0xf7   : > { %2835 = vmatpush1.bf16.msra.mxu0 %v4094_v45  ;;  %2750 = vmatprep.subr.bf16.mxu1 %v4099_v46  ;;  %v4183_v45 = vld [vmem:[%s4968_s19 + $0x12c] ss:$24 sps:$4 sm:$0xff]  }
  0xf8   : > { %2836 = vmatprep.subr.bf16.mxu0 %v4102_v47  ;;  %v4186_v46 = vld [vmem:[%s4968_s19 + $0x134] ss:$24 sps:$4 sm:$0xff]   ;;  %v4181_v47 = vld [vmem:[%s4968_s19 + $0x128] ss:$24 sps:$4 sm:$0xff]  }
  0xfa   : > { %2751 = vmatpush1.bf16.msra.mxu1 %v4097_v48  ;;  %v4184_v48 = vld [vmem:[%s4968_s19 + $0x130] ss:$24 sps:$4 sm:$0xff]  }
  0xfb   : > { %2837 = vmatpush1.bf16.msra.mxu0 %v4100_v49  ;;  %2752 = vmatprep.subr.bf16.mxu1 %v4105_v50  ;;  %v4189_v49 = vld [vmem:[%s4968_s19 + $0x15c] ss:$24 sps:$4 sm:$0xff]  }
  0xfc   : > { %2838 = vmatprep.subr.bf16.mxu0 %v4108_v51  ;;  %v4192_v50 = vld [vmem:[%s4968_s19 + $0x164] ss:$24 sps:$4 sm:$0xff]   ;;  %v4187_v51 = vld [vmem:[%s4968_s19 + $0x158] ss:$24 sps:$4 sm:$0xff]  }
  0xfe   : > { %2753 = vmatpush1.bf16.msra.mxu1 %v4103_v53  ;;  %v4190_v53 = vld [vmem:[%s4968_s19 + $0x160] ss:$24 sps:$4 sm:$0xff]  }
  0xff   : > { %2839 = vmatpush1.bf16.msra.mxu0 %v4106_v54  ;;  %2754 = vmatprep.subr.bf16.mxu1 %v4111_v56  ;;  %v4195_v54 = vld [vmem:[%s4968_s19 + $0x18c] ss:$24 sps:$4 sm:$0xff]  }
 0x100   : > { %2840 = vmatprep.subr.bf16.mxu0 %v4114_v57  ;;  %v4198_v56 = vld [vmem:[%s4968_s19 + $0x194] ss:$24 sps:$4 sm:$0xff]   ;;  %v4193_v57 = vld [vmem:[%s4968_s19 + $0x188] ss:$24 sps:$4 sm:$0xff]  }
 0x102   : > { %2755 = vmatpush1.bf16.msra.mxu1 %v4109_v58  ;;  %v4196_v58 = vld [vmem:[%s4968_s19 + $0x190] ss:$24 sps:$4 sm:$0xff]  }
 0x103   : > { %2841 = vmatpush1.bf16.msra.mxu0 %v4112_v59  ;;  %2756 = vmatprep.subr.bf16.mxu1 %v4117_v60  ;;  %v4201_v59 = vld [vmem:[%s4968_s19 + $0x1bc] ss:$24 sps:$4 sm:$0xff]  }
 0x104   : > { %2842 = vmatprep.subr.bf16.mxu0 %v4120_v61  ;;  %v4204_v60 = vld [vmem:[%s4968_s19 + $0x1c4] ss:$24 sps:$4 sm:$0xff]   ;;  %v4199_v61 = vld [vmem:[%s4968_s19 + $0x1b8] ss:$24 sps:$4 sm:$0xff]  }
 0x106   : > { %2757 = vmatpush1.bf16.msra.mxu1 %v4115_v62  ;;  %v4202_v62 = vld [vmem:[%s4968_s19 + $0x1c0] ss:$24 sps:$4 sm:$0xff]  }
 0x107   : > { %2843 = vmatpush1.bf16.msra.mxu0 %v4118_v63  ;;  %2758 = vmatprep.subr.bf16.mxu1 %v4123_v0  ;;  %v4207_v63 = vld [vmem:[%s4968_s19 + $0x1ec] ss:$24 sps:$4 sm:$0xff]  }
 0x108   : > { %2844 = vmatprep.subr.bf16.mxu0 %v4126_v1  ;;  %v4210_v0 = vld [vmem:[%s4968_s19 + $0x1f4] ss:$24 sps:$4 sm:$0xff]   ;;  %v4205_v1 = vld [vmem:[%s4968_s19 + $0x1e8] ss:$24 sps:$4 sm:$0xff]  }
 0x10a   : > { %2759 = vmatpush1.bf16.msra.mxu1 %v4121_v2  ;;  %v4208_v2 = vld [vmem:[%s4968_s19 + $0x1f0] ss:$24 sps:$4 sm:$0xff]  }
 0x10b   : > { %2845 = vmatpush1.bf16.msra.mxu0 %v4124_v3  ;;  %2760 = vmatprep.subr.bf16.mxu1 %v4129_v4  ;;  %v4213_v3 = vld [vmem:[%s4968_s19 + $0x21c] ss:$24 sps:$4 sm:$0xff]  }
 0x10c   : > { %2846 = vmatprep.subr.bf16.mxu0 %v4132_v5  ;;  %v4216_v4 = vld [vmem:[%s4968_s19 + $0x224] ss:$24 sps:$4 sm:$0xff]   ;;  %v4211_v5 = vld [vmem:[%s4968_s19 + $0x218] ss:$24 sps:$4 sm:$0xff]  }
 0x10e   : > { %2761 = vmatpush1.bf16.msra.mxu1 %v4127_v6  ;;  %v4214_v6 = vld [vmem:[%s4968_s19 + $0x220] ss:$24 sps:$4 sm:$0xff]  }
 0x10f   : > { %2847 = vmatpush1.bf16.msra.mxu0 %v4130_v7  ;;  %2762 = vmatprep.subr.bf16.mxu1 %v4135_v8  ;;  %v4219_v7 = vld [vmem:[%s4968_s19 + $0x24c] ss:$24 sps:$4 sm:$0xff]  }
 0x110   : > { %2848 = vmatprep.subr.bf16.mxu0 %v4138_v9  ;;  %v4222_v8 = vld [vmem:[%s4968_s19 + $0x254] ss:$24 sps:$4 sm:$0xff]   ;;  %v4217_v9 = vld [vmem:[%s4968_s19 + $0x248] ss:$24 sps:$4 sm:$0xff]  }
 0x112   : > { %2763 = vmatpush1.bf16.msra.mxu1 %v4133_v12  ;;  %v4220_v12 = vld [vmem:[%s4968_s19 + $0x250] ss:$24 sps:$4 sm:$0xff]  }
 0x113   : > { %2849 = vmatpush1.bf16.msra.mxu0 %v4136_v13  ;;  %2764 = vmatprep.subr.bf16.mxu1 %v4141_v14  ;;  %v4225_v13 = vld [vmem:[%s4968_s19 + $0x27c] ss:$24 sps:$4 sm:$0xff]  }
 0x114   : > { %2850 = vmatprep.subr.bf16.mxu0 %v4144_v15  ;;  %v4228_v14 = vld [vmem:[%s4968_s19 + $0x284] ss:$24 sps:$4 sm:$0xff]   ;;  %v4223_v15 = vld [vmem:[%s4968_s19 + $0x278] ss:$24 sps:$4 sm:$0xff]  }
 0x116   : > { %2765 = vmatpush1.bf16.msra.mxu1 %v4139_v16  ;;  %v4226_v16 = vld [vmem:[%s4968_s19 + $0x280] ss:$24 sps:$4 sm:$0xff]  }
 0x117   : > { %2851 = vmatpush1.bf16.msra.mxu0 %v4142_v17  ;;  %2863 = vmatprep.subr.bf16.mxu1 %v4147_v18  ;;  %v4231_v17 = vld [vmem:[%s4968_s19 + $0x2ac] ss:$24 sps:$4 sm:$0xff]  }
 0x118   : > { %3035 = vmatprep.subr.bf16.mxu0 %v4150_v19  ;;  %v4234_v18 = vld [vmem:[%s4968_s19 + $0x2b4] ss:$24 sps:$4 sm:$0xff]   ;;  %v4229_v19 = vld [vmem:[%s4968_s19 + $0x2a8] ss:$24 sps:$4 sm:$0xff]  }
 0x119   : > { %2767 = vmatmul.mubr.bf16.vlgmr.msra.gmra.mrb[0].mxu1 %v5146_v20 }
 0x11a   : > { %2853 = vmatmul.mubr.bf16.vlgmr.msra.gmra.mrb[0].mxu0 %v5150_v21  ;;  %2864 = vmatpush1.bf16.msra.mxu1 %v4145_v22  ;;  %v4232_v22 = vld [vmem:[%s4968_s19 + $0x2b0] ss:$24 sps:$4 sm:$0xff]  }
 0x11b   : > { %3036 = vmatpush1.bf16.msra.mxu0 %v4148_v23  ;;  %2865 = vmatprep.subr.bf16.mxu1 %v4153_v24  ;;  %v4237_v23 = vld [vmem:[%s4968_s19 + $0x2dc] ss:$24 sps:$4 sm:$0xff]  }
 0x11c   : > { %3037 = vmatprep.subr.bf16.mxu0 %v4156_v25  ;;  %2895 = vmatprep.mubr.bf16.mxu1 %v5034_v52  ;;  %v4240_v24 = vld [vmem:[%s4968_s19 + $0x2e4] ss:$24 sps:$4 sm:$0xff]   ;;  %v4235_v25 = vld [vmem:[%s4968_s19 + $0x2d8] ss:$24 sps:$4 sm:$0xff]  }
 0x11d   : > { %3067 = vmatprep.mubr.bf16.mxu0 %v5034_v52  ;;  %v4171_v52 = vld [vmem:[%s4968_s19 + $0xcc] ss:$24 sps:$4 sm:$0xff]  }
 0x11e   : > { %2866 = vmatpush1.bf16.msra.mxu1 %v4151_v26  ;;  %v4238_v26 = vld [vmem:[%s4968_s19 + $0x2e0] ss:$24 sps:$4 sm:$0xff]  }
 0x11f   : > { %3038 = vmatpush1.bf16.msra.mxu0 %v4154_v27  ;;  %2867 = vmatprep.subr.bf16.mxu1 %v4159_v28  ;;  %v4243_v27 = vld [vmem:[%s4968_s19 + $0x30c] ss:$24 sps:$4 sm:$0xff]  }
 0x120   : > { %3039 = vmatprep.subr.bf16.mxu0 %v4162_v29  ;;  %v4246_v28 = vld [vmem:[%s4968_s19 + $0x314] ss:$24 sps:$4 sm:$0xff]   ;;  %v4241_v29 = vld [vmem:[%s4968_s19 + $0x308] ss:$24 sps:$4 sm:$0xff]  }
 0x122   : > { %2868 = vmatpush1.bf16.msra.mxu1 %v4157_v30  ;;  %v4244_v30 = vld [vmem:[%s4968_s19 + $0x310] ss:$24 sps:$4 sm:$0xff]  }
 0x123   : > { %3040 = vmatpush1.bf16.msra.mxu0 %v4160_v31  ;;  %2869 = vmatprep.subr.bf16.mxu1 %v4165_v32  ;;  %v4249_v31 = vld [vmem:[%s4968_s19 + $0x33c] ss:$24 sps:$4 sm:$0xff]  }
 0x124   : > { %3041 = vmatprep.subr.bf16.mxu0 %v4168_v33  ;;  %v4252_v32 = vld [vmem:[%s4968_s19 + $0x344] ss:$24 sps:$4 sm:$0xff]   ;;  %v4247_v33 = vld [vmem:[%s4968_s19 + $0x338] ss:$24 sps:$4 sm:$0xff]  }
 0x126   : > { %2870 = vmatpush1.bf16.msra.mxu1 %v4163_v34  ;;  %v4250_v34 = vld [vmem:[%s4968_s19 + $0x340] ss:$24 sps:$4 sm:$0xff]  }
 0x127   : > { %3042 = vmatpush1.bf16.msra.mxu0 %v4166_v35  ;;  %2871 = vmatprep.subr.bf16.mxu1 %v4171_v52  ;;  %v4255_v35 = vld [vmem:[%s4968_s19 + $0x36c] ss:$24 sps:$4 sm:$0xff]  }
 0x128   : > { %3043 = vmatprep.subr.bf16.mxu0 %v4174_v36  ;;  %v4258_v52 = vld [vmem:[%s4968_s19 + $0x374] ss:$24 sps:$4 sm:$0xff]   ;;  %v4253_v36 = vld [vmem:[%s4968_s19 + $0x368] ss:$24 sps:$4 sm:$0xff]  }
 0x12a   : > { %2872 = vmatpush1.bf16.msra.mxu1 %v4169_v37  ;;  %v4261_v37 = vld [vmem:[%s4968_s19 + $0x39c] ss:$24 sps:$4 sm:$0xff]  }
 0x12b   : > { %3044 = vmatpush1.bf16.msra.mxu0 %v4172_v38  ;;  %2873 = vmatprep.subr.bf16.mxu1 %v4177_v39  ;;  %v4264_v38 = vld [vmem:[%s4968_s19 + $0x3a4] ss:$24 sps:$4 sm:$0xff]   ;;  %v4259_v39 = vld [vmem:[%s4968_s19 + $0x398] ss:$24 sps:$4 sm:$0xff]  }
 0x12c   : > { %3045 = vmatprep.subr.bf16.mxu0 %v4180_v40  ;;  %v4262_v40 = vld [vmem:[%s4968_s19 + $0x3a0] ss:$24 sps:$4 sm:$0xff]  }
 0x12e   : > { %2874 = vmatpush1.bf16.msra.mxu1 %v4175_v42  ;;  %v4270_v42 = vld [vmem:[%s4968_s19 + $0x3d4] ss:$24 sps:$4 sm:$0xff]  }
 0x12f   : > { %3046 = vmatpush1.bf16.msra.mxu0 %v4178_v44  ;;  %2875 = vmatprep.subr.bf16.mxu1 %v4183_v45  ;;  %v4265_v44 = vld [vmem:[%s4968_s19 + $0x3c8] ss:$24 sps:$4 sm:$0xff]  }
 0x130   : > { %3047 = vmatprep.subr.bf16.mxu0 %v4186_v46  ;;  %v4268_v45 = vld [vmem:[%s4968_s19 + $0x3d0] ss:$24 sps:$4 sm:$0xff]   ;;  %v4273_v46 = vld [vmem:[%s4968_s19 + $0x3fc] ss:$24 sps:$4 sm:$0xff]  }
 0x132   : > { %2876 = vmatpush1.bf16.msra.mxu1 %v4181_v47  ;;  %v4276_v47 = vld [vmem:[%s4968_s19 + $0x404] ss:$24 sps:$4 sm:$0xff]  }
 0x133   : > { %3048 = vmatpush1.bf16.msra.mxu0 %v4184_v48  ;;  %2877 = vmatprep.subr.bf16.mxu1 %v4189_v49  ;;  %v4271_v48 = vld [vmem:[%s4968_s19 + $0x3f8] ss:$24 sps:$4 sm:$0xff]  }
 0x134   : > { %3049 = vmatprep.subr.bf16.mxu0 %v4192_v50  ;;  %v4274_v49 = vld [vmem:[%s4968_s19 + $0x400] ss:$24 sps:$4 sm:$0xff]   ;;  %v4279_v50 = vld [vmem:[%s4968_s19 + $0x42c] ss:$24 sps:$4 sm:$0xff]  }
 0x136   : > { %2878 = vmatpush1.bf16.msra.mxu1 %v4187_v51  ;;  %v4282_v51 = vld [vmem:[%s4968_s19 + $0x434] ss:$24 sps:$4 sm:$0xff]  }
 0x137   : > { %3050 = vmatpush1.bf16.msra.mxu0 %v4190_v53  ;;  %2879 = vmatprep.subr.bf16.mxu1 %v4195_v54  ;;  %v4277_v53 = vld [vmem:[%s4968_s19 + $0x428] ss:$24 sps:$4 sm:$0xff]  }
 0x138   : > { %3051 = vmatprep.subr.bf16.mxu0 %v4198_v56  ;;  %v4280_v54 = vld [vmem:[%s4968_s19 + $0x430] ss:$24 sps:$4 sm:$0xff]   ;;  %v4285_v56 = vld [vmem:[%s4968_s19 + $0x45c] ss:$24 sps:$4 sm:$0xff]  }
 0x13a   : > { %2880 = vmatpush1.bf16.msra.mxu1 %v4193_v57  ;;  %v4288_v57 = vld [vmem:[%s4968_s19 + $0x464] ss:$24 sps:$4 sm:$0xff]  }
 0x13b   : > { %3052 = vmatpush1.bf16.msra.mxu0 %v4196_v58  ;;  %2881 = vmatprep.subr.bf16.mxu1 %v4201_v59  ;;  %v4283_v58 = vld [vmem:[%s4968_s19 + $0x458] ss:$24 sps:$4 sm:$0xff]  }
 0x13c   : > { %3053 = vmatprep.subr.bf16.mxu0 %v4204_v60  ;;  %v4286_v59 = vld [vmem:[%s4968_s19 + $0x460] ss:$24 sps:$4 sm:$0xff]   ;;  %v4291_v60 = vld [vmem:[%s4968_s19 + $0x48c] ss:$24 sps:$4 sm:$0xff]  }
 0x13e   : > { %2882 = vmatpush1.bf16.msra.mxu1 %v4199_v61  ;;  %v4294_v61 = vld [vmem:[%s4968_s19 + $0x494] ss:$24 sps:$4 sm:$0xff]  }
 0x13f   : > { %3054 = vmatpush1.bf16.msra.mxu0 %v4202_v62  ;;  %2883 = vmatprep.subr.bf16.mxu1 %v4207_v63  ;;  %v4289_v62 = vld [vmem:[%s4968_s19 + $0x488] ss:$24 sps:$4 sm:$0xff]  }
 0x140   : > { %3055 = vmatprep.subr.bf16.mxu0 %v4210_v0  ;;  %v4292_v63 = vld [vmem:[%s4968_s19 + $0x490] ss:$24 sps:$4 sm:$0xff]   ;;  %v4297_v0 = vld [vmem:[%s4968_s19 + $0x4bc] ss:$24 sps:$4 sm:$0xff]  }
 0x142   : > { %2884 = vmatpush1.bf16.msra.mxu1 %v4205_v1  ;;  %v4300_v1 = vld [vmem:[%s4968_s19 + $0x4c4] ss:$24 sps:$4 sm:$0xff]  }
 0x143   : > { %3056 = vmatpush1.bf16.msra.mxu0 %v4208_v2  ;;  %2885 = vmatprep.subr.bf16.mxu1 %v4213_v3  ;;  %v4295_v2 = vld [vmem:[%s4968_s19 + $0x4b8] ss:$24 sps:$4 sm:$0xff]  }
 0x144   : > { %3057 = vmatprep.subr.bf16.mxu0 %v4216_v4  ;;  %v4298_v3 = vld [vmem:[%s4968_s19 + $0x4c0] ss:$24 sps:$4 sm:$0xff]   ;;  %v4303_v4 = vld [vmem:[%s4968_s19 + $0x4ec] ss:$24 sps:$4 sm:$0xff]  }
 0x146   : > { %2886 = vmatpush1.bf16.msra.mxu1 %v4211_v5  ;;  %v4306_v5 = vld [vmem:[%s4968_s19 + $0x4f4] ss:$24 sps:$4 sm:$0xff]  }
 0x147   : > { %3058 = vmatpush1.bf16.msra.mxu0 %v4214_v6  ;;  %2887 = vmatprep.subr.bf16.mxu1 %v4219_v7  ;;  %v4301_v6 = vld [vmem:[%s4968_s19 + $0x4e8] ss:$24 sps:$4 sm:$0xff]  }
 0x148   : > { %3059 = vmatprep.subr.bf16.mxu0 %v4222_v8  ;;  %v4304_v7 = vld [vmem:[%s4968_s19 + $0x4f0] ss:$24 sps:$4 sm:$0xff]   ;;  %v4309_v8 = vld [vmem:[%s4968_s19 + $0x51c] ss:$24 sps:$4 sm:$0xff]  }
 0x14a   : > { %2888 = vmatpush1.bf16.msra.mxu1 %v4217_v9  ;;  %v4312_v9 = vld [vmem:[%s4968_s19 + $0x524] ss:$24 sps:$4 sm:$0xff]  }
 0x14b   : > { %3060 = vmatpush1.bf16.msra.mxu0 %v4220_v12  ;;  %2889 = vmatprep.subr.bf16.mxu1 %v4225_v13  ;;  %v4307_v12 = vld [vmem:[%s4968_s19 + $0x518] ss:$24 sps:$4 sm:$0xff]  }
 0x14c   : > { %3061 = vmatprep.subr.bf16.mxu0 %v4228_v14  ;;  %v4310_v13 = vld [vmem:[%s4968_s19 + $0x520] ss:$24 sps:$4 sm:$0xff]   ;;  %v4315_v14 = vld [vmem:[%s4968_s19 + $0x54c] ss:$24 sps:$4 sm:$0xff]  }
 0x14e   : > { %2890 = vmatpush1.bf16.msra.mxu1 %v4223_v15  ;;  %v4318_v15 = vld [vmem:[%s4968_s19 + $0x554] ss:$24 sps:$4 sm:$0xff]  }
 0x14f   : > { %3062 = vmatpush1.bf16.msra.mxu0 %v4226_v16  ;;  %2891 = vmatprep.subr.bf16.mxu1 %v4231_v17  ;;  %v4313_v16 = vld [vmem:[%s4968_s19 + $0x548] ss:$24 sps:$4 sm:$0xff]  }
 0x150   : > { %3063 = vmatprep.subr.bf16.mxu0 %v4234_v18  ;;  %v4316_v17 = vld [vmem:[%s4968_s19 + $0x550] ss:$24 sps:$4 sm:$0xff]   ;;  %v4321_v18 = vld [vmem:[%s4968_s19 + $0x57c] ss:$24 sps:$4 sm:$0xff]  }
 0x152   : > { %2892 = vmatpush1.bf16.msra.mxu1 %v4229_v19  ;;  %v4324_v19 = vld [vmem:[%s4968_s19 + $0x584] ss:$24 sps:$4 sm:$0xff]  }
 0x153   : > { %3064 = vmatpush1.bf16.msra.mxu0 %v4232_v22  ;;  %2893 = vmatprep.subr.bf16.mxu1 %v4237_v23  ;;  %v4319_v22 = vld [vmem:[%s4968_s19 + $0x578] ss:$24 sps:$4 sm:$0xff]  }
 0x154   : > { %3065 = vmatprep.subr.bf16.mxu0 %v4240_v24  ;;  %v4322_v23 = vld [vmem:[%s4968_s19 + $0x580] ss:$24 sps:$4 sm:$0xff]   ;;  %v4327_v24 = vld [vmem:[%s4968_s19 + $0x5ac] ss:$24 sps:$4 sm:$0xff]  }
 0x156   : > { %2894 = vmatpush1.bf16.msra.mxu1 %v4235_v25  ;;  %v4330_v25 = vld [vmem:[%s4968_s19 + $0x5b4] ss:$24 sps:$4 sm:$0xff]  }
 0x157   : > { %3066 = vmatpush1.bf16.msra.mxu0 %v4238_v26  ;;  %2906 = vmatprep.subr.bf16.mxu1 %v4243_v27  ;;  %v4325_v26 = vld [vmem:[%s4968_s19 + $0x5a8] ss:$24 sps:$4 sm:$0xff]  }
 0x158   : > { %3078 = vmatprep.subr.bf16.mxu0 %v4246_v28  ;;  %v4328_v27 = vld [vmem:[%s4968_s19 + $0x5b0] ss:$24 sps:$4 sm:$0xff]   ;;  %v4333_v28 = vld [vmem:[%s4968_s19 + $0x5dc] ss:$24 sps:$4 sm:$0xff]  }
 0x159   : > { %2896 = vmatmul.mubr.bf16.vlgmr.msra.gmra.mrb[4].mxu1 %v5058_v10 }
 0x15a   : > { %3068 = vmatmul.mubr.bf16.vlgmr.msra.gmra.mrb[4].mxu0 %v5058_v10  ;;  %2907 = vmatpush1.bf16.msra.mxu1 %v4241_v29  ;;  %v4256_v10 = vld [vmem:[%s4968_s19 + $0x370] ss:$24 sps:$4 sm:$0xff]   ;;  %v4336_v29 = vld [vmem:[%s4968_s19 + $0x5e4] ss:$24 sps:$4 sm:$0xff]  }
 0x15b   : > { %3079 = vmatpush1.bf16.msra.mxu0 %v4244_v30  ;;  %2908 = vmatprep.subr.bf16.mxu1 %v4249_v31  ;;  %v4331_v30 = vld [vmem:[%s4968_s19 + $0x5d8] ss:$24 sps:$4 sm:$0xff]  }
 0x15c   : > { %3080 = vmatprep.subr.bf16.mxu0 %v4252_v32  ;;  %2938 = vmatprep.mubr.bf16.mxu1 %v5099_v41  ;;  %v4334_v31 = vld [vmem:[%s4968_s19 + $0x5e0] ss:$24 sps:$4 sm:$0xff]   ;;  %v4339_v32 = vld [vmem:[%s4968_s19 + $0x60c] ss:$24 sps:$4 sm:$0xff]  }
 0x15d   : > { %3110 = vmatprep.mubr.bf16.mxu0 %v5099_v41  ;;  %v4267_v41 = vld [vmem:[%s4968_s19 + $0x3cc] ss:$24 sps:$4 sm:$0xff]  }
 0x15e   : > { %2909 = vmatpush1.bf16.msra.mxu1 %v4247_v33  ;;  %v4342_v33 = vld [vmem:[%s4968_s19 + $0x614] ss:$24 sps:$4 sm:$0xff]  }
 0x15f   : > { %3081 = vmatpush1.bf16.msra.mxu0 %v4250_v34  ;;  %2910 = vmatprep.subr.bf16.mxu1 %v4255_v35  ;;  %v4337_v34 = vld [vmem:[%s4968_s19 + $0x608] ss:$24 sps:$4 sm:$0xff]  }
 0x160   : > { %3082 = vmatprep.subr.bf16.mxu0 %v4258_v52  ;;  %v4340_v35 = vld [vmem:[%s4968_s19 + $0x610] ss:$24 sps:$4 sm:$0xff]   ;;  %v4345_v52 = vld [vmem:[%s4968_s19 + $0x63c] ss:$24 sps:$4 sm:$0xff]  }
 0x162   : > { %2911 = vmatpush1.bf16.msra.mxu1 %v4253_v36  ;;  %v4348_v36 = vld [vmem:[%s4968_s19 + $0x644] ss:$24 sps:$4 sm:$0xff]  }
 0x163   : > { %3083 = vmatpush1.bf16.msra.mxu0 %v4256_v10  ;;  %2912 = vmatprep.subr.bf16.mxu1 %v4261_v37  ;;  %v4343_v10 = vld [vmem:[%s4968_s19 + $0x638] ss:$24 sps:$4 sm:$0xff]  }
 0x164   : > { %3084 = vmatprep.subr.bf16.mxu0 %v4264_v38  ;;  %v4346_v37 = vld [vmem:[%s4968_s19 + $0x640] ss:$24 sps:$4 sm:$0xff]   ;;  %v4351_v38 = vld [vmem:[%s4968_s19 + $0x66c] ss:$24 sps:$4 sm:$0xff]  }
 0x166   : > { %2913 = vmatpush1.bf16.msra.mxu1 %v4259_v39  ;;  %v4354_v39 = vld [vmem:[%s4968_s19 + $0x674] ss:$24 sps:$4 sm:$0xff]  }
 0x167   : > { %3085 = vmatpush1.bf16.msra.mxu0 %v4262_v40  ;;  %2914 = vmatprep.subr.bf16.mxu1 %v4267_v41  ;;  %v4352_v40 = vld [vmem:[%s4968_s19 + $0x670] ss:$24 sps:$4 sm:$0xff]   ;;  %v4357_v41 = vld [vmem:[%s4968_s19 + $0x69c] ss:$24 sps:$4 sm:$0xff]  }
 0x168   : > { %3086 = vmatprep.subr.bf16.mxu0 %v4270_v42  ;;  %v4360_v42 = vld [vmem:[%s4968_s19 + $0x6a4] ss:$24 sps:$4 sm:$0xff]  }
 0x16a   : > { %2915 = vmatpush1.bf16.msra.mxu1 %v4265_v44  ;;  %v4355_v44 = vld [vmem:[%s4968_s19 + $0x698] ss:$24 sps:$4 sm:$0xff]  }
 0x16b   : > { %3087 = vmatpush1.bf16.msra.mxu0 %v4268_v45  ;;  %2916 = vmatprep.subr.bf16.mxu1 %v4273_v46  ;;  %v4358_v45 = vld [vmem:[%s4968_s19 + $0x6a0] ss:$24 sps:$4 sm:$0xff]   ;;  %v4366_v46 = vld [vmem:[%s4968_s19 + $0x6d4] ss:$24 sps:$4 sm:$0xff]  }
 0x16c   : > { %3088 = vmatprep.subr.bf16.mxu0 %v4276_v47  ;;  %v4361_v47 = vld [vmem:[%s4968_s19 + $0x6c8] ss:$24 sps:$4 sm:$0xff]  }
 0x16e   : > { %2917 = vmatpush1.bf16.msra.mxu1 %v4271_v48  ;;  %v4364_v48 = vld [vmem:[%s4968_s19 + $0x6d0] ss:$24 sps:$4 sm:$0xff]  }
 0x16f   : > { %3089 = vmatpush1.bf16.msra.mxu0 %v4274_v49  ;;  %2918 = vmatprep.subr.bf16.mxu1 %v4279_v50  ;;  %v4369_v49 = vld [vmem:[%s4968_s19 + $0x6fc] ss:$24 sps:$4 sm:$0xff]  }
 0x170   : > { %3090 = vmatprep.subr.bf16.mxu0 %v4282_v51  ;;  %v4372_v50 = vld [vmem:[%s4968_s19 + $0x704] ss:$24 sps:$4 sm:$0xff]   ;;  %v4367_v51 = vld [vmem:[%s4968_s19 + $0x6f8] ss:$24 sps:$4 sm:$0xff]  }
 0x172   : > { %2919 = vmatpush1.bf16.msra.mxu1 %v4277_v53  ;;  %v4370_v53 = vld [vmem:[%s4968_s19 + $0x700] ss:$24 sps:$4 sm:$0xff]  }
 0x173   : > { %3091 = vmatpush1.bf16.msra.mxu0 %v4280_v54  ;;  %2920 = vmatprep.subr.bf16.mxu1 %v4285_v56  ;;  %v4375_v54 = vld [vmem:[%s4968_s19 + $0x72c] ss:$24 sps:$4 sm:$0xff]  }
 0x174   : > { %3092 = vmatprep.subr.bf16.mxu0 %v4288_v57  ;;  %v4378_v56 = vld [vmem:[%s4968_s19 + $0x734] ss:$24 sps:$4 sm:$0xff]   ;;  %v4373_v57 = vld [vmem:[%s4968_s19 + $0x728] ss:$24 sps:$4 sm:$0xff]  }
 0x176   : > { %2921 = vmatpush1.bf16.msra.mxu1 %v4283_v58  ;;  %v4376_v58 = vld [vmem:[%s4968_s19 + $0x730] ss:$24 sps:$4 sm:$0xff]  }
 0x177   : > { %3093 = vmatpush1.bf16.msra.mxu0 %v4286_v59  ;;  %2922 = vmatprep.subr.bf16.mxu1 %v4291_v60  ;;  %v4381_v59 = vld [vmem:[%s4968_s19 + $0x75c] ss:$24 sps:$4 sm:$0xff]  }
 0x178   : > { %3094 = vmatprep.subr.bf16.mxu0 %v4294_v61  ;;  %v4384_v60 = vld [vmem:[%s4968_s19 + $0x764] ss:$24 sps:$4 sm:$0xff]   ;;  %v4379_v61 = vld [vmem:[%s4968_s19 + $0x758] ss:$24 sps:$4 sm:$0xff]  }
 0x17a   : > { %2923 = vmatpush1.bf16.msra.mxu1 %v4289_v62  ;;  %v4382_v62 = vld [vmem:[%s4968_s19 + $0x760] ss:$24 sps:$4 sm:$0xff]  }
 0x17b   : > { %3095 = vmatpush1.bf16.msra.mxu0 %v4292_v63  ;;  %2924 = vmatprep.subr.bf16.mxu1 %v4297_v0  ;;  %v4387_v63 = vld [vmem:[%s4968_s19 + $0x78c] ss:$24 sps:$4 sm:$0xff]  }
 0x17c   : > { %3096 = vmatprep.subr.bf16.mxu0 %v4300_v1  ;;  %v4390_v0 = vld [vmem:[%s4968_s19 + $0x794] ss:$24 sps:$4 sm:$0xff]   ;;  %v4385_v1 = vld [vmem:[%s4968_s19 + $0x788] ss:$24 sps:$4 sm:$0xff]  }
 0x17e   : > { %2925 = vmatpush1.bf16.msra.mxu1 %v4295_v2  ;;  %v4388_v2 = vld [vmem:[%s4968_s19 + $0x790] ss:$24 sps:$4 sm:$0xff]  }
 0x17f   : > { %3097 = vmatpush1.bf16.msra.mxu0 %v4298_v3  ;;  %2926 = vmatprep.subr.bf16.mxu1 %v4303_v4  ;;  %v4393_v3 = vld [vmem:[%s4968_s19 + $0x7bc] ss:$24 sps:$4 sm:$0xff]  }
 0x180   : > { %3098 = vmatprep.subr.bf16.mxu0 %v4306_v5  ;;  %v4396_v4 = vld [vmem:[%s4968_s19 + $0x7c4] ss:$24 sps:$4 sm:$0xff]   ;;  %v4391_v5 = vld [vmem:[%s4968_s19 + $0x7b8] ss:$24 sps:$4 sm:$0xff]  }
 0x182   : > { %2927 = vmatpush1.bf16.msra.mxu1 %v4301_v6  ;;  %v4394_v6 = vld [vmem:[%s4968_s19 + $0x7c0] ss:$24 sps:$4 sm:$0xff]  }
 0x183   : > { %3099 = vmatpush1.bf16.msra.mxu0 %v4304_v7  ;;  %2928 = vmatprep.subr.bf16.mxu1 %v4309_v8  ;;  %v4399_v7 = vld [vmem:[%s4968_s19 + $0x7ec] ss:$24 sps:$4 sm:$0xff]  }
 0x184   : > { %3100 = vmatprep.subr.bf16.mxu0 %v4312_v9  ;;  %v4402_v8 = vld [vmem:[%s4968_s19 + $0x7f4] ss:$24 sps:$4 sm:$0xff]   ;;  %v4397_v9 = vld [vmem:[%s4968_s19 + $0x7e8] ss:$24 sps:$4 sm:$0xff]  }
 0x186   : > { %2929 = vmatpush1.bf16.msra.mxu1 %v4307_v12  ;;  %v4400_v12 = vld [vmem:[%s4968_s19 + $0x7f0] ss:$24 sps:$4 sm:$0xff]  }
 0x187   : > { %3101 = vmatpush1.bf16.msra.mxu0 %v4310_v13  ;;  %2930 = vmatprep.subr.bf16.mxu1 %v4315_v14  ;;  %v4405_v13 = vld [vmem:[%s4968_s19 + $0x81c] ss:$24 sps:$4 sm:$0xff]  }
 0x188   : > { %3102 = vmatprep.subr.bf16.mxu0 %v4318_v15  ;;  %v4408_v14 = vld [vmem:[%s4968_s19 + $0x824] ss:$24 sps:$4 sm:$0xff]   ;;  %v4403_v15 = vld [vmem:[%s4968_s19 + $0x818] ss:$24 sps:$4 sm:$0xff]  }
 0x18a   : > { %2931 = vmatpush1.bf16.msra.mxu1 %v4313_v16  ;;  %v4406_v16 = vld [vmem:[%s4968_s19 + $0x820] ss:$24 sps:$4 sm:$0xff]  }
 0x18b   : > { %3103 = vmatpush1.bf16.msra.mxu0 %v4316_v17  ;;  %2932 = vmatprep.subr.bf16.mxu1 %v4321_v18  ;;  %v4411_v17 = vld [vmem:[%s4968_s19 + $0x84c] ss:$24 sps:$4 sm:$0xff]  }
 0x18c   : > { %3104 = vmatprep.subr.bf16.mxu0 %v4324_v19  ;;  %v4414_v18 = vld [vmem:[%s4968_s19 + $0x854] ss:$24 sps:$4 sm:$0xff]   ;;  %v4409_v19 = vld [vmem:[%s4968_s19 + $0x848] ss:$24 sps:$4 sm:$0xff]  }
 0x18e   : > { %2933 = vmatpush1.bf16.msra.mxu1 %v4319_v22  ;;  %v4412_v22 = vld [vmem:[%s4968_s19 + $0x850] ss:$24 sps:$4 sm:$0xff]  }
 0x18f   : > { %3105 = vmatpush1.bf16.msra.mxu0 %v4322_v23  ;;  %2934 = vmatprep.subr.bf16.mxu1 %v4327_v24  ;;  %v4417_v23 = vld [vmem:[%s4968_s19 + $0x87c] ss:$24 sps:$4 sm:$0xff]  }
 0x190   : > { %3106 = vmatprep.subr.bf16.mxu0 %v4330_v25  ;;  %v4420_v24 = vld [vmem:[%s4968_s19 + $0x884] ss:$24 sps:$4 sm:$0xff]   ;;  %v4415_v25 = vld [vmem:[%s4968_s19 + $0x878] ss:$24 sps:$4 sm:$0xff]  }
 0x192   : > { %2935 = vmatpush1.bf16.msra.mxu1 %v4325_v26  ;;  %v4418_v26 = vld [vmem:[%s4968_s19 + $0x880] ss:$24 sps:$4 sm:$0xff]  }
 0x193   : > { %3107 = vmatpush1.bf16.msra.mxu0 %v4328_v27  ;;  %2936 = vmatprep.subr.bf16.mxu1 %v4333_v28  ;;  %v4423_v27 = vld [vmem:[%s4968_s19 + $0x8ac] ss:$24 sps:$4 sm:$0xff]  }
 0x194   : > { %3108 = vmatprep.subr.bf16.mxu0 %v4336_v29  ;;  %v4426_v28 = vld [vmem:[%s4968_s19 + $0x8b4] ss:$24 sps:$4 sm:$0xff]   ;;  %v4421_v29 = vld [vmem:[%s4968_s19 + $0x8a8] ss:$24 sps:$4 sm:$0xff]  }
 0x196   : > { %2937 = vmatpush1.bf16.msra.mxu1 %v4331_v30  ;;  %v4424_v30 = vld [vmem:[%s4968_s19 + $0x8b0] ss:$24 sps:$4 sm:$0xff]  }
 0x197   : > { %3109 = vmatpush1.bf16.msra.mxu0 %v4334_v31  ;;  %2949 = vmatprep.subr.bf16.mxu1 %v4339_v32  ;;  %v4429_v31 = vld [vmem:[%s4968_s19 + $0x8dc] ss:$24 sps:$4 sm:$0xff]  }
 0x198   : > { %3121 = vmatprep.subr.bf16.mxu0 %v4342_v33  ;;  %v4432_v32 = vld [vmem:[%s4968_s19 + $0x8e4] ss:$24 sps:$4 sm:$0xff]   ;;  %v4427_v33 = vld [vmem:[%s4968_s19 + $0x8d8] ss:$24 sps:$4 sm:$0xff]  }
 0x199   : > { %2939 = vmatmul.mubr.bf16.vlgmr.msra.gmra.mrb[4].mxu1 %v5146_v20 }
 0x19a   : > { %3111 = vmatmul.mubr.bf16.vlgmr.msra.gmra.mrb[4].mxu0 %v5146_v20  ;;  %2950 = vmatpush1.bf16.msra.mxu1 %v4337_v34  ;;  %v4349_v20 = vld [vmem:[%s4968_s19 + $0x668] ss:$24 sps:$4 sm:$0xff]  }
 0x19b   : > { %3122 = vmatpush1.bf16.msra.mxu0 %v4340_v35  ;;  %2951 = vmatprep.subr.bf16.mxu1 %v4345_v52  ;;  %v4430_v34 = vld [vmem:[%s4968_s19 + $0x8e0] ss:$24 sps:$4 sm:$0xff]   ;;  %v4435_v35 = vld [vmem:[%s4968_s19 + $0x90c] ss:$24 sps:$4 sm:$0xff]  }
 0x19c   : > { %3123 = vmatprep.subr.bf16.mxu0 %v4348_v36  ;;  %2981 = vmatprep.mubr.bf16.mxu1 %v5037_v55  ;;  %v4438_v52 = vld [vmem:[%s4968_s19 + $0x914] ss:$24 sps:$4 sm:$0xff]   ;;  %v4433_v36 = vld [vmem:[%s4968_s19 + $0x908] ss:$24 sps:$4 sm:$0xff]  }
 0x19d   : > { %3153 = vmatprep.mubr.bf16.mxu0 %v5037_v55  ;;  %v4363_v55 = vld [vmem:[%s4968_s19 + $0x6cc] ss:$24 sps:$4 sm:$0xff]  }
 0x19e   : > { %2952 = vmatpush1.bf16.msra.mxu1 %v4343_v10  ;;  %v4436_v10 = vld [vmem:[%s4968_s19 + $0x910] ss:$24 sps:$4 sm:$0xff]  }
 0x19f   : > { %3124 = vmatpush1.bf16.msra.mxu0 %v4346_v37  ;;  %2953 = vmatprep.subr.bf16.mxu1 %v4351_v38  ;;  %v4441_v37 = vld [vmem:[%s4968_s19 + $0x93c] ss:$24 sps:$4 sm:$0xff]  }
 0x1a0   : > { %3125 = vmatprep.subr.bf16.mxu0 %v4354_v39  ;;  %v4444_v38 = vld [vmem:[%s4968_s19 + $0x944] ss:$24 sps:$4 sm:$0xff]   ;;  %v4439_v39 = vld [vmem:[%s4968_s19 + $0x938] ss:$24 sps:$4 sm:$0xff]  }
 0x1a2   : > { %2954 = vmatpush1.bf16.msra.mxu1 %v4349_v20  ;;  %v4442_v20 = vld [vmem:[%s4968_s19 + $0x940] ss:$24 sps:$4 sm:$0xff]  }
 0x1a3   : > { %3126 = vmatpush1.bf16.msra.mxu0 %v4352_v40  ;;  %2955 = vmatprep.subr.bf16.mxu1 %v4357_v41  ;;  %v4447_v40 = vld [vmem:[%s4968_s19 + $0x96c] ss:$24 sps:$4 sm:$0xff]  }
 0x1a4   : > { %3127 = vmatprep.subr.bf16.mxu0 %v4360_v42  ;;  %v4450_v41 = vld [vmem:[%s4968_s19 + $0x974] ss:$24 sps:$4 sm:$0xff]   ;;  %v701_v42 = vlaneseq }
 0x1a6   : > { %2956 = vmatpush1.bf16.msra.mxu1 %v4355_v44  ;;  %v4448_v44 = vld [vmem:[%s4968_s19 + $0x970] ss:$24 sps:$4 sm:$0xff]  }
 0x1a7   : > { %3128 = vmatpush1.bf16.msra.mxu0 %v4358_v45  ;;  %2957 = vmatprep.subr.bf16.mxu1 %v4363_v55  ;;  %v4453_v45 = vld [vmem:[%s4968_s19 + $0x99c] ss:$24 sps:$4 sm:$0xff]  }
 0x1a8   : > { %3129 = vmatprep.subr.bf16.mxu0 %v4366_v46  ;;  %v4456_v55 = vld [vmem:[%s4968_s19 + $0x9a4] ss:$24 sps:$4 sm:$0xff]   ;;  %v5372_v46 = vshrl.u32 %v701_v42, 7 }
 0x1aa   : > { %2958 = vmatpush1.bf16.msra.mxu1 %v4361_v47  ;;  %v4454_v47 = vld [vmem:[%s4968_s19 + $0x9a0] ss:$24 sps:$4 sm:$0xff]  }
 0x1ab   : > { %3130 = vmatpush1.bf16.msra.mxu0 %v4364_v48  ;;  %2959 = vmatprep.subr.bf16.mxu1 %v4369_v49  ;;  %v4459_v48 = vld [vmem:[%s4968_s19 + $0x9cc] ss:$24 sps:$4 sm:$0xff]  }
 0x1ac   : > { %3131 = vmatprep.subr.bf16.mxu0 %v4372_v50  ;;  %v4462_v49 = vld [vmem:[%s4968_s19 + $0x9d4] ss:$24 sps:$4 sm:$0xff]   ;;  %v703_v50 = vsub.s32 0, %v5372_v46 }
 0x1ae   : > { %2960 = vmatpush1.bf16.msra.mxu1 %v4367_v51  ;;  %v707_v51 = vsub.s32 1, %v5372_v46 }
 0x1af   : > { %3132 = vmatpush1.bf16.msra.mxu0 %v4370_v53  ;;  %2961 = vmatprep.subr.bf16.mxu1 %v4375_v54  ;;  %v4457_v53 = vld [vmem:[%s4968_s19 + $0x9c8] ss:$24 sps:$4 sm:$0xff]  }
 0x1b0   : > { %3133 = vmatprep.subr.bf16.mxu0 %v4378_v56  ;;  %v4460_v54 = vld [vmem:[%s4968_s19 + $0x9d0] ss:$24 sps:$4 sm:$0xff]  }
 0x1b1   : > { %v5383_v56 = vld [vmem:[%s4975_s11] sm:$0x3f] }
 0x1b2   : > { %2962 = vmatpush1.bf16.msra.mxu1 %v4373_v57  ;;  %v4465_v57 = vld [vmem:[%s4968_s19 + $0x9fc] ss:$24 sps:$4 sm:$0xff]  }
 0x1b3   : > { %3134 = vmatpush1.bf16.msra.mxu0 %v4376_v58  ;;  %2963 = vmatprep.subr.bf16.mxu1 %v4381_v59  ;;  %v4468_v58 = vld [vmem:[%s4968_s19 + $0xa04] ss:$24 sps:$4 sm:$0xff]   ;;  %v704_v59 = vrot.slane %v5383_v56, %v703_v50 }
 0x1b4   : > { %3135 = vmatprep.subr.bf16.mxu0 %v4384_v60  ;;  %v708_v60 = vrot.slane %v5383_v56, %v707_v51 }
 0x1b6   : > { %2964 = vmatpush1.bf16.msra.mxu1 %v4379_v61  ;;  %v4463_v61 = vld [vmem:[%s4968_s19 + $0x9f8] ss:$24 sps:$4 sm:$0xff]  }
 0x1b7   : > { %3136 = vmatpush1.bf16.msra.mxu0 %v4382_v62  ;;  %2965 = vmatprep.subr.bf16.mxu1 %v4387_v63  ;;  %v4466_v62 = vld [vmem:[%s4968_s19 + $0xa00] ss:$24 sps:$4 sm:$0xff]   ;;  %v4471_v63 = vld [vmem:[%s4968_s19 + $0xa2c] ss:$24 sps:$4 sm:$0xff]  }
 0x1b8   : > { %3137 = vmatprep.subr.bf16.mxu0 %v4390_v0  ;;  %v4474_v0 = vld [vmem:[%s4968_s19 + $0xa34] ss:$24 sps:$4 sm:$0xff]  }
 0x1ba   : > { %2966 = vmatpush1.bf16.msra.mxu1 %v4385_v1 }
 0x1bb   : > { %3138 = vmatpush1.bf16.msra.mxu0 %v4388_v2  ;;  %2967 = vmatprep.subr.bf16.mxu1 %v4393_v3  ;;  %v5394_v3 = vld [vmem:[%s4978_s14] sm:$0x3f] }
 0x1bc   : > { %3139 = vmatprep.subr.bf16.mxu0 %v4396_v4 }
 0x1be   : > { %2968 = vmatpush1.bf16.msra.mxu1 %v4391_v5 }
 0x1bf   : > { %3140 = vmatpush1.bf16.msra.mxu0 %v4394_v6  ;;  %2969 = vmatprep.subr.bf16.mxu1 %v4399_v7 }
 0x1c0   : > { %3141 = vmatprep.subr.bf16.mxu0 %v4402_v8 }
 0x1c2   : > { %2970 = vmatpush1.bf16.msra.mxu1 %v4397_v9 }
 0x1c3   : > { %3142 = vmatpush1.bf16.msra.mxu0 %v4400_v12  ;;  %2971 = vmatprep.subr.bf16.mxu1 %v4405_v13  ;;  %v4469_v12 = vld [vmem:[%s4968_s19 + $0xa28] ss:$24 sps:$4 sm:$0xff]  }
 0x1c4   : > { %3143 = vmatprep.subr.bf16.mxu0 %v4408_v14  ;;  %v4472_v13 = vld [vmem:[%s4968_s19 + $0xa30] ss:$24 sps:$4 sm:$0xff]  }
 0x1c6   : > { %2972 = vmatpush1.bf16.msra.mxu1 %v4403_v15  ;;  %v3224_v15 = vrot.slane %v5394_v3, %v703_v50  ;;  %v4499_v50 = vld [vmem:[%s4968_s19 + $0xb18] ss:$24 sps:$4 sm:$0xff]  }
 0x1c7   : > { %3144 = vmatpush1.bf16.msra.mxu0 %v4406_v16  ;;  %2973 = vmatprep.subr.bf16.mxu1 %v4411_v17 }
 0x1c8   : > { %3145 = vmatprep.subr.bf16.mxu0 %v4414_v18 }
 0x1ca   : > { %2974 = vmatpush1.bf16.msra.mxu1 %v4409_v19  ;;  %v4477_v19 = vld [vmem:[%s4968_s19 + $0xa5c] ss:$24 sps:$4 sm:$0xff]  }
 0x1cb   : > { %3146 = vmatpush1.bf16.msra.mxu0 %v4412_v22  ;;  %2975 = vmatprep.subr.bf16.mxu1 %v4417_v23  ;;  %v4480_v22 = vld [vmem:[%s4968_s19 + $0xa64] ss:$24 sps:$4 sm:$0xff]  }
 0x1cc   : > { %3147 = vmatprep.subr.bf16.mxu0 %v4420_v24  ;;  %v3228_v24 = vrot.slane %v5394_v3, %v707_v51  ;;  %v4502_v51 = vld [vmem:[%s4968_s19 + $0xb20] ss:$24 sps:$4 sm:$0xff]  }
 0x1ce   : > { %2976 = vmatpush1.bf16.msra.mxu1 %v4415_v25 }
 0x1cf   : > { %3148 = vmatpush1.bf16.msra.mxu0 %v4418_v26  ;;  %2977 = vmatprep.subr.bf16.mxu1 %v4423_v27 }
 0x1d0   : > { %3149 = vmatprep.subr.bf16.mxu0 %v4426_v28 }
 0x1d2   : > { %2978 = vmatpush1.bf16.msra.mxu1 %v4421_v29 }
 0x1d3   : > { %3150 = vmatpush1.bf16.msra.mxu0 %v4424_v30  ;;  %2979 = vmatprep.subr.bf16.mxu1 %v4429_v31  ;;  %v4475_v30 = vld [vmem:[%s4968_s19 + $0xa58] ss:$24 sps:$4 sm:$0xff]  }
 0x1d4   : > { %3151 = vmatprep.subr.bf16.mxu0 %v4432_v32  ;;  %v4478_v31 = vld [vmem:[%s4968_s19 + $0xa60] ss:$24 sps:$4 sm:$0xff]  }
 0x1d6   : > { %2980 = vmatpush1.bf16.msra.mxu1 %v4427_v33 }
 0x1d7   : > { %3152 = vmatpush1.bf16.msra.mxu0 %v4430_v34  ;;  %2992 = vmatprep.subr.bf16.mxu1 %v4435_v35  ;;  %v4483_v34 = vld [vmem:[%s4968_s19 + $0xa8c] ss:$24 sps:$4 sm:$0xff]  }
 0x1d8   : > { %3164 = vmatprep.subr.bf16.mxu0 %v4438_v52  ;;  %v4486_v35 = vld [vmem:[%s4968_s19 + $0xa94] ss:$24 sps:$4 sm:$0xff]  }
 0x1d9   : > { %2982 = vmatmul.mubr.bf16.vlgmr.msra.gmra.mrb[4].mxu1 %v5060_v11 }
 0x1da   : > { %3154 = vmatmul.mubr.bf16.vlgmr.msra.gmra.mrb[4].mxu0 %v5060_v11  ;;  %2993 = vmatpush1.bf16.msra.mxu1 %v4433_v36  ;;  %v4445_v11 = vld [vmem:[%s4968_s19 + $0x968] ss:$24 sps:$4 sm:$0xff]  }
 0x1db   : > { %3165 = vmatpush1.bf16.msra.mxu0 %v4436_v10  ;;  %2994 = vmatprep.subr.bf16.mxu1 %v4441_v37 }
 0x1dc   : > { %3166 = vmatprep.subr.bf16.mxu0 %v4444_v38  ;;  %3024 = vmatprep.mubr.bf16.mxu1 %v5104_v43 }
 0x1dd   : > { %3196 = vmatprep.mubr.bf16.mxu0 %v5104_v43  ;;  %v4451_v43 = vld [vmem:[%s4968_s19 + $0x998] ss:$24 sps:$4 sm:$0xff]  }
 0x1de   : > { %2995 = vmatpush1.bf16.msra.mxu1 %v4439_v39  ;;  %v4481_v39 = vld [vmem:[%s4968_s19 + $0xa88] ss:$24 sps:$4 sm:$0xff]  }
 0x1df   : > { %3167 = vmatpush1.bf16.msra.mxu0 %v4442_v20  ;;  %2996 = vmatprep.subr.bf16.mxu1 %v4447_v40  ;;  %v4484_v20 = vld [vmem:[%s4968_s19 + $0xa90] ss:$24 sps:$4 sm:$0xff]   ;;  %v4489_v40 = vld [vmem:[%s4968_s19 + $0xabc] ss:$24 sps:$4 sm:$0xff]  }
 0x1e0   : > { %3168 = vmatprep.subr.bf16.mxu0 %v4450_v41  ;;  %v4492_v41 = vld [vmem:[%s4968_s19 + $0xac4] ss:$24 sps:$4 sm:$0xff]  }
 0x1e2   : > { %2997 = vmatpush1.bf16.msra.mxu1 %v4445_v11  ;;  %v4487_v11 = vld [vmem:[%s4968_s19 + $0xab8] ss:$24 sps:$4 sm:$0xff]  }
 0x1e3   : > { %3169 = vmatpush1.bf16.msra.mxu0 %v4448_v44  ;;  %2998 = vmatprep.subr.bf16.mxu1 %v4453_v45  ;;  %v4490_v44 = vld [vmem:[%s4968_s19 + $0xac0] ss:$24 sps:$4 sm:$0xff]   ;;  %v4495_v45 = vld [vmem:[%s4968_s19 + $0xaec] ss:$24 sps:$4 sm:$0xff]  }
 0x1e4   : > { %3170 = vmatprep.subr.bf16.mxu0 %v4456_v55  ;;  %v4498_v55 = vld [vmem:[%s4968_s19 + $0xaf4] ss:$24 sps:$4 sm:$0xff]  }
 0x1e6   : > { %2999 = vmatpush1.bf16.msra.mxu1 %v4451_v43  ;;  %v4493_v43 = vld [vmem:[%s4968_s19 + $0xae8] ss:$24 sps:$4 sm:$0xff]  }
 0x1e7   : > { %3171 = vmatpush1.bf16.msra.mxu0 %v4454_v47  ;;  %3000 = vmatprep.subr.bf16.mxu1 %v4459_v48  ;;  %v4496_v47 = vld [vmem:[%s4968_s19 + $0xaf0] ss:$24 sps:$4 sm:$0xff]   ;;  %v4501_v48 = vld [vmem:[%s4968_s19 + $0xb1c] ss:$24 sps:$4 sm:$0xff]  }
 0x1e8   : > { %3172 = vmatprep.subr.bf16.mxu0 %v4462_v49  ;;  %v4504_v49 = vld [vmem:[%s4968_s19 + $0xb24] ss:$24 sps:$4 sm:$0xff]  }
 0x1ea   : > { %3001 = vmatpush1.bf16.msra.mxu1 %v4457_v53  ;;  %v4507_v53 = vld [vmem:[%s4968_s19 + $0xb4c] ss:$24 sps:$4 sm:$0xff]  }
 0x1eb   : > { %3173 = vmatpush1.bf16.msra.mxu0 %v4460_v54  ;;  %3002 = vmatprep.subr.bf16.mxu1 %v4465_v57  ;;  %v4510_v54 = vld [vmem:[%s4968_s19 + $0xb54] ss:$24 sps:$4 sm:$0xff]   ;;  %v4505_v57 = vld [vmem:[%s4968_s19 + $0xb48] ss:$24 sps:$4 sm:$0xff]  }
 0x1ec   : > { %3174 = vmatprep.subr.bf16.mxu0 %v4468_v58  ;;  %v2768_v1 = vpop.f32.mrb[0].mxu1  ;;  %v4508_v58 = vld [vmem:[%s4968_s19 + $0xb50] ss:$24 sps:$4 sm:$0xff]  }
 0x1ed   : > { %v2854_v2 = vpop.f32.mrb[0].mxu0  ;;  %v3825_v4 = vadd.f32 %v2768_v1, %v704_v59  ;;  %v2770_v5 = vpop.f32.mrb[1].mxu1  ;;  %v4517_v1 = vld [vmem:[%s4968_s19 + $0xba8] ss:$24 sps:$4 sm:$0xff]  }
 0x1ee   : > { %v2856_v6 = vpop.f32.mrb[1].mxu0  ;;  %v3827_v7 = vadd.f32 %v2770_v5, %v708_v60  ;;  %v2772_v8 = vpop.f32.mrb[2].mxu1  ;;  %3003 = vmatpush1.bf16.msra.mxu1 %v4463_v61  ;;  %v4511_v61 = vld [vmem:[%s4968_s19 + $0xb78] ss:$24 sps:$4 sm:$0xff]   ;;  %v4528_v5 = vld [vmem:[%s4968_s19 + $0xbe4] ss:$24 sps:$4 sm:$0xff]  }
 0x1ef   : > { %v2858_v9 = vpop.f32.mrb[2].mxu0  ;;  %3175 = vmatpush1.bf16.msra.mxu0 %v4466_v62  ;;  %v3826_v14 = vadd.f32 %v3825_v4, %v2854_v2  ;;  %v3829_v16 = vadd.f32 %v2772_v8, %v704_v59  ;;  %v2774_v17 = vpop.f32.mrb[3].mxu1  ;;  %3004 = vmatprep.subr.bf16.mxu1 %v4471_v63  ;;  %v4513_v59 = vld [vmem:[%s4968_s19 + $0xb7c] ss:$24 sps:$4 sm:$0xff]   ;;  %v4514_v62 = vld [vmem:[%s4968_s19 + $0xb80] ss:$24 sps:$4 sm:$0xff]  }
 0x1f0   : > { %v2860_v18 = vpop.f32.mrb[3].mxu0  ;;  %3176 = vmatprep.subr.bf16.mxu0 %v4474_v0  ;;  %v3828_v23 = vadd.f32 %v3827_v7, %v2856_v6  ;;  %v3831_v25 = vadd.f32 %v2774_v17, %v708_v60  ;;  %v4516_v60 = vld [vmem:[%s4968_s19 + $0xb84] ss:$24 sps:$4 sm:$0xff]   ;;  %v4522_v0 = vld [vmem:[%s4968_s19 + $0xbb4] ss:$24 sps:$4 sm:$0xff]   ;;  %v711_v8 = vsub.s32 2, %v5372_v46 }
 0x1f1   : > { %v3207_v26 = vmax.f32 %v3826_v14, 0.0  ;;  %v3830_v27 = vadd.f32 %v3829_v16, %v2858_v9  ;;  %v4519_v63 = vld [vmem:[%s4968_s19 + $0xbac] ss:$24 sps:$4 sm:$0xff]   ;;  %v4520_v2 = vld [vmem:[%s4968_s19 + $0xbb0] ss:$24 sps:$4 sm:$0xff]   ;;  %v719_v9 = vsub.s32 4, %v5372_v46 }
 0x1f2   : > { %v3208_v28 = vmax.f32 %v3828_v23, 0.0  ;;  %v3832_v29 = vadd.f32 %v3831_v25, %v2860_v18  ;;  %3005 = vmatpush1.bf16.msra.mxu1 %v4469_v12  ;;  %v4525_v4 = vld [vmem:[%s4968_s19 + $0xbdc] ss:$24 sps:$4 sm:$0xff]   ;;  %v4523_v6 = vld [vmem:[%s4968_s19 + $0xbd8] ss:$24 sps:$4 sm:$0xff]   ;;  %v715_v12 = vsub.s32 3, %v5372_v46  ;;  %v712_v14 = vrot.slane %v5383_v56, %v711_v8 }
 0x1f3   : > { %3177 = vmatpush1.bf16.msra.mxu0 %v4472_v13  ;;  %v3251_v32 = vmul.f32 %v3224_v15, %v3207_v26  ;;  %v3213_v33 = vmax.f32 %v3830_v27, 0.0  ;;  %3006 = vmatprep.subr.bf16.mxu1 %v4477_v19  ;;  %v4526_v7 = vld [vmem:[%s4968_s19 + $0xbe0] ss:$24 sps:$4 sm:$0xff]   ;;  %v723_v13 = vsub.s32 5, %v5372_v46 }
 0x1f4   : > { %3178 = vmatprep.subr.bf16.mxu0 %v4480_v22  ;;  %v3252_v52 = vmul.f32 %v3228_v24, %v3208_v28  ;;  %v3214_v36 = vmax.f32 %v3832_v29, 0.0  ;;  %v716_v16 = vrot.slane %v5383_v56, %v715_v12  ;;  %v3236_v46 = vrot.slane %v5394_v3, %v715_v12 }
 0x1f5   : > { %v3257_v10 = vmul.f32 %v3224_v15, %v3213_v33  ;;  %v720_v15 = vrot.slane %v5383_v56, %v719_v9  ;;  %v724_v17 = vrot.slane %v5383_v56, %v723_v13 }
 0x1f6   : > { %v5406_v37 = vadd.f32 %v3252_v52, %v3251_v32  ;;  %v3258_v38 = vmul.f32 %v3228_v24, %v3214_v36  ;;  %3007 = vmatpush1.bf16.msra.mxu1 %v4475_v30 }
 0x1f7   : > { %3179 = vmatpush1.bf16.msra.mxu0 %v4478_v31  ;;  %3008 = vmatprep.subr.bf16.mxu1 %v4483_v34  ;;  %v3240_v34 = vrot.slane %v5394_v3, %v719_v9 }
 0x1f8   : > { %3180 = vmatprep.subr.bf16.mxu0 %v4486_v35  ;;  %v5412_v42 = vadd.f32 %v3258_v38, %v3257_v10 }
 0x1fa   : > { %3009 = vmatpush1.bf16.msra.mxu1 %v4481_v39 }
 0x1fb   : > { %3181 = vmatpush1.bf16.msra.mxu0 %v4484_v20  ;;  %3010 = vmatprep.subr.bf16.mxu1 %v4489_v40  ;;  %v3244_v40 = vrot.slane %v5394_v3, %v723_v13 }
 0x1fc   : > { %3182 = vmatprep.subr.bf16.mxu0 %v4492_v41 }
 0x1fe   : > { %3011 = vmatpush1.bf16.msra.mxu1 %v4487_v11 }
 0x1ff   : > { %3183 = vmatpush1.bf16.msra.mxu0 %v4490_v44  ;;  %3012 = vmatprep.subr.bf16.mxu1 %v4495_v45 }
 0x200   : > { %3184 = vmatprep.subr.bf16.mxu0 %v4498_v55 }
 0x202   : > { %3013 = vmatpush1.bf16.msra.mxu1 %v4493_v43 }
 0x203   : > { %3185 = vmatpush1.bf16.msra.mxu0 %v4496_v47  ;;  %3014 = vmatprep.subr.bf16.mxu1 %v4501_v48 }
 0x204   : > { %3186 = vmatprep.subr.bf16.mxu0 %v4504_v49 }
 0x206   : > { %3015 = vmatpush1.bf16.msra.mxu1 %v4499_v50 }
 0x207   : > { %3187 = vmatpush1.bf16.msra.mxu0 %v4502_v51  ;;  %3016 = vmatprep.subr.bf16.mxu1 %v4507_v53 }
 0x208   : > { %3188 = vmatprep.subr.bf16.mxu0 %v4510_v54 }
 0x20a   : > { %3017 = vmatpush1.bf16.msra.mxu1 %v4505_v57 }
 0x20b   : > { %3189 = vmatpush1.bf16.msra.mxu0 %v4508_v58  ;;  %3018 = vmatprep.subr.bf16.mxu1 %v4513_v59 }
 0x20c   : > { %3190 = vmatprep.subr.bf16.mxu0 %v4516_v60 }
 0x20e   : > { %3019 = vmatpush1.bf16.msra.mxu1 %v4511_v61 }
 0x20f   : > { %3191 = vmatpush1.bf16.msra.mxu0 %v4514_v62  ;;  %3020 = vmatprep.subr.bf16.mxu1 %v4519_v63 }
 0x210   : > { %3192 = vmatprep.subr.bf16.mxu0 %v4522_v0 }
 0x212   : > { %3021 = vmatpush1.bf16.msra.mxu1 %v4517_v1 }
 0x213   : > { %3193 = vmatpush1.bf16.msra.mxu0 %v4520_v2  ;;  %3022 = vmatprep.subr.bf16.mxu1 %v4525_v4 }
 0x214   : > { %3194 = vmatprep.subr.bf16.mxu0 %v4528_v5 }
 0x216   : > { %3023 = vmatpush1.bf16.msra.mxu1 %v4523_v6 }
 0x217   : > { %3195 = vmatpush1.bf16.msra.mxu0 %v4526_v7 }
 0x219   : > { %3025 = vmatmul.mubr.bf16.vlgmr.msra.gmra.mrb[4].mxu1 %v5150_v21 }
 0x21a   : > { %3197 = vmatmul.mubr.bf16.vlgmr.msra.gmra.mrb[4].mxu0 %v5150_v21  ;;  %v3232_v21 = vrot.slane %v5394_v3, %v711_v8 }
 0x2ec   : > { %v3026_v18 = vpop.f32.mrb[4].mxu1 }
 0x2ed   : > { %v3198_v19 = vpop.f32.mrb[4].mxu0  ;;  %v3833_v22 = vadd.f32 %v3026_v18, %v712_v14  ;;  %v3028_v24 = vpop.f32.mrb[5].mxu1 }
 0x2ee   : > { %v3837_v23 = vadd.f32 %v3198_v19, %v720_v15  ;;  %v3200_v25 = vpop.f32.mrb[5].mxu0  ;;  %v3834_v26 = vadd.f32 %v3028_v24, %v716_v16  ;;  %v3030_v27 = vpop.f32.mrb[6].mxu1 }
 0x2ef   : > { %v3202_v28 = vpop.f32.mrb[6].mxu0  ;;  %v3209_v29 = vmax.f32 %v3833_v22, 0.0  ;;  %v3838_v30 = vadd.f32 %v3200_v25, %v724_v17  ;;  %v3835_v31 = vadd.f32 %v3030_v27, %v712_v14  ;;  %v3032_v33 = vpop.f32.mrb[7].mxu1 }
 0x2f0   : > { %v3839_v32 = vadd.f32 %v3202_v28, %v720_v15  ;;  %v3204_v56 = vpop.f32.mrb[7].mxu0  ;;  %v3210_v35 = vmax.f32 %v3834_v26, 0.0  ;;  %v3836_v52 = vadd.f32 %v3032_v33, %v716_v16  ;;  %v3211_v10 = vmax.f32 %v3837_v23, 0.0 }
 0x2f1   : > { %v3253_v36 = vmul.f32 %v3232_v21, %v3209_v29  ;;  %v3215_v38 = vmax.f32 %v3835_v31, 0.0  ;;  %v3840_v39 = vadd.f32 %v3204_v56, %v724_v17  ;;  %v3212_v44 = vmax.f32 %v3838_v30, 0.0 }
 0x2f2   : > { %v3254_v20 = vmul.f32 %v3236_v46, %v3210_v35  ;;  %v3216_v41 = vmax.f32 %v3836_v52, 0.0  ;;  %v3217_v55 = vmax.f32 %v3839_v32, 0.0  ;;  %v3255_v47 = vmul.f32 %v3240_v34, %v3211_v10 }
 0x2f3   : > { %v3265_v11 = vadd.f32 %v5406_v37, %v3253_v36  ;;  %v3259_v45 = vmul.f32 %v3232_v21, %v3215_v38  ;;  %v3218_v50 = vmax.f32 %v3840_v39, 0.0  ;;  %v3256_v51 = vmul.f32 %v3244_v40, %v3212_v44 }
 0x2f4   : > { %v3260_v43 = vmul.f32 %v3236_v46, %v3216_v41  ;;  %v3261_v3 = vmul.f32 %v3240_v34, %v3217_v55 }
 0x2f5   : > { %v3267_v48 = vadd.f32 %v3265_v11, %v3254_v20  ;;  %v3266_v49 = vadd.f32 %v5412_v42, %v3259_v45  ;;  %v3262_v37 = vmul.f32 %v3244_v40, %v3218_v50 }
 0x2f7   : > { %v3269_v53 = vadd.f32 %v3267_v48, %v3255_v47  ;;  %v3268_v54 = vadd.f32 %v3266_v49, %v3260_v43 }
 0x2f9   : > { %v3271_v57 = vadd.f32 %v3269_v53, %v3256_v51  ;;  %v3270_v58 = vadd.f32 %v3268_v54, %v3261_v3 }
 0x2fb   : > { %3273 = vst [vmem:[%s303_s21] sm:$0xff] %v3271_v57  ;;  %v3272_v42 = vadd.f32 %v3270_v58, %v3262_v37 }
 0x2fd   : > { %3274 = vst [vmem:[%s303_s21 + $0x8] sm:$0xff] %v3272_v42 }
 0x2fe   : > { %4660 = shalt.err (!%p4657_p11)
}
 0x2ff   : > { %s4661_s7 = scalar_lea.hbm %s5463_s12, 256  ;;  %s4665_s9 = scalar_lea.hbm %s5511_s4, 512 }
 0x300   : > { %p4662_p0 = scmp.ne.s32.totalorder %s5463_s12, %s4661_s7  ;;  %p4666_p1 = scmp.lt.u32.totalorder %s5463_s12, %s5511_s4 }
 0x301   : > { %p4667_p8 = scmp.lt.u32.totalorder %s4665_s9, %s4661_s7  ;;  %p4669_p4 = scmp.lt.u32.totalorder %s4661_s7, %s5463_s12 }
 0x302   : > { %p4663_p13 = pnand %p4662_p0, %p5548_p9 }
 0x303   : > { %p4668_p2 = por %p4667_p8, %p4666_p1 }
 0x304   : > { %p4664_p10 = pneg %p4663_p13 }
 0x305   : > { %p4670_p12 = por %p4669_p4, %p4668_p2 }
 0x307   : > { %p4671_p6 = pnand %p4670_p12, %p4664_p10 }
 0x309   : > { %4674 = shalt.err (!%p4671_p6)
}
 0x30a   : > { %s4733_s19 = smov 128   ;;  %s4734_s18 = smov 256  }
 0x30b   : > { %s4735_s11 = smov 8  }
 0x30c   : > { %3888 = dma.vmem_to_hbm [thread:$0]  (%p5548_p9), %s5458_s22, 256, %s5463_s12, %s3276_s20, %s4733_s19, %s4734_s18, %s4735_s11  }
 0x30d PF: > { %s5549_s23 = sld [smem:[#allocation19_spill]]  ;;  %s5550_s14 = sld [smem:[#allocation16_spill]] }
 0x30e   : > { %s3303_s10 = sand.u32 1, %s4709_s15  }
 0x30f   : > { %s3304_s21 = scalar_lea.sflag [#allocation4], %s3303_s10 }
 0x313   : > { %p5551_p3 = scmp.ne.s32.totalorder %s5549_s23, 0  ;;  %p5552_p5 = scmp.ge.s32.totalorder %s5550_s14, 2 }
 0x315   : > { %p3905_p7 = pnand %p5552_p5, %p5551_p3 }
 0x317   : > { %4704 = dma.done.wait (!%p3905_p7), %s3304_s21, 256  }
 0x318   : > { %4706 = vsyncadd (!%p3905_p7), %s3304_s21, 4294967040  ;;  %s5553_s18 = sld [smem:[#allocation17_spill]]  ;;  %s5554_s6 = sld [smem:[#allocation15_spill]] }
 0x319   : > { %s5555_s17 = sld [smem:[#allocation18_spill]]  ;;  %s5556_s15 = smov %s4713_s16 }
 0x31e   : > { %p21_p11 = scmp.ge.s32.totalorder %s5553_s18, 4   ;;  %s5557_s16 = smov %s5554_s6 }
 0x320   :  { %23 = sbr.rel (!%p21_p11) target bundleno = 10 (0xa), region = 110 }
 0x327   :  { %3309 = vsyncpa [#allocation3], 1 }
 0x328   :  { %3311 = vsyncpa [#allocation3 + $0x1], 1 }
 0x329   :  { %3312 = vsyncpa [#allocation6], 1 }
 0x32a   :  { %3314 = vsyncpa [#allocation6 + $0x1], 1 }
 0x32b   :  { %3315 = vsyncpa [#allocation9], 1 }
 0x32c   :  { %3317 = vsyncpa [#allocation9 + $0x1], 1 }
 0x32d   :  { %3318 = vsyncpa [#allocation4], 1 }
 0x32e   :  { %3320 = vsyncpa [#allocation4 + $0x1], 1 }

</bundles_post_ra>
